<compile_context>
chip_gen: v6e
topology: v6e:2x2x1
jax: 0.10.0
libtpu: 0.0.40
codegen_flags: <defaults>
</compile_context>

<pallas_src>
import jax
import jax.numpy as jnp
from jax.experimental import pallas as pl
from jax.experimental.pallas import tpu as pltpu

IN_DIM = 5600
HIDDEN = 64
OUT_DIM = 8
OUT_PAD = 128                  # lane-dense padded output width

# Packed small-parameter layout: single (200, 128) f32 VMEM input, one DMA.
#   row 0            : b1 (lanes 0:64)
#   row 1            : b2 (lanes 0:64, zeros beyond)
#   row 2            : b3 (lanes 0:OUT_DIM, zeros beyond)
#   rows   8 ..  71  : w2 (64 x 64 real, zero-padded to 64 x 128)
#   rows  72 .. 199  : w3 (64 x OUT_DIM real, zero-padded to 128 x 128)
_W2_ROW = 8
_W3_ROW = _W2_ROW + HIDDEN          # 72
_SMALL_ROWS = _W3_ROW + OUT_PAD     # 200 (multiple of 8)


def _mlp_kernel(x_ref, w1_ref, small_ref, o_ref):
    """Grid = (m_tiles,). x_ref: (bm, IN_DIM) bf16, w1_ref: (IN_DIM, HIDDEN) bf16."""
    # Layer 1: full-K bf16 x bf16 on the MXU, f32 accumulation.
    h1 = jnp.dot(x_ref[...], w1_ref[...], preferred_element_type=jnp.float32)
    b1 = small_ref[0:1, 0:HIDDEN]                         # (1, 64)
    h1 = jnp.maximum(h1 + b1, 0.0)                        # (bm, 64)

    # Layer 2: lane-dense weights (zero-padded cols 64:128 stay zero through relu).
    w2 = small_ref[_W2_ROW:_W2_ROW + HIDDEN, :]           # (64, 128)
    b2 = small_ref[1:2, :]                                # (1, 128)
    h2 = jnp.maximum(
        jnp.dot(h1, w2, preferred_element_type=jnp.float32) + b2, 0.0)

    # Layer 3: lane-dense weights (zero rows 64:128 kill the padded h2 lanes).
    w3 = small_ref[_W3_ROW:_W3_ROW + OUT_PAD, :]          # (128, 128)
    b3 = small_ref[2:3, :]                                # (1, 128)
    out = jnp.dot(h2, w3, preferred_element_type=jnp.float32) + b3
    o_ref[...] = out.astype(o_ref.dtype)                  # (bm, 128) lane-dense


def _round_up(n, m):
    return (n + m - 1) // m * m


def _tile_plan(b):
    """Return (bm, b_pad, n_tiles). Batched calls get >= 2 m tiles (v7x 2nd TC)."""
    b8 = _round_up(b, 8)
    if b8 <= 8:
        return b8, b8, 1                       # single-obs path: one tiny tile
    n_tiles = max(2, -(-b8 // 512))            # >= 2 tiles, cap tile rows at ~512
    bm = _round_up(-(-b8 // n_tiles), 8)
    return bm, n_tiles * bm, n_tiles


@jax.jit
def _forward(x, params):
    """x: (B, IN_DIM) float32 -> (B, OUT_DIM) float32."""
    b = x.shape[0]
    bm, b_pad, n_tiles = _tile_plan(b)

    # Build the kernel input directly in bf16 (no extra f32 padding pass).
    xb = x.astype(jnp.bfloat16)
    if b_pad != b:
        xb = jnp.zeros((b_pad, IN_DIM), jnp.bfloat16).at[:b].set(xb)

    out = pl.pallas_call(
        _mlp_kernel,
        out_shape=jax.ShapeDtypeStruct((b_pad, OUT_PAD), jnp.float32),
        grid_spec=pltpu.PrefetchScalarGridSpec(
            num_scalar_prefetch=0,
            grid=(n_tiles,),
            in_specs=[
                # activations: new (bm, full-K) tile every m step
                pl.BlockSpec((bm, IN_DIM), lambda i: (i, 0)),
                # bf16 layer-1 weights: constant block index -> DMA'd once, resident
                pl.BlockSpec((IN_DIM, HIDDEN), lambda i: (0, 0)),
                # packed small params: constant block index -> DMA'd once, resident
                pl.BlockSpec((_SMALL_ROWS, OUT_PAD), lambda i: (0, 0)),
            ],
            out_specs=pl.BlockSpec((bm, OUT_PAD), lambda i: (i, 0)),
        ),
        compiler_params=pltpu.CompilerParams(
            dimension_semantics=("parallel",),
            vmem_limit_bytes=32 * 1024 * 1024),
    )(xb, params["w1"], params["small"])

    return out[:b, :OUT_DIM]


def feedforward_nn(obs, params):
    """Original FeedForwardNN.forward semantics: flatten the whole obs to (1, 5600)."""
    x = jnp.asarray(obs, jnp.float32).reshape(1, -1)
    assert x.shape == (1, IN_DIM), f"expected {IN_DIM} elements, got {x.shape}"
    return _forward(x, params)


def feedforward_nn_batched(obs_batch, params):
    """Batched rollout variant: (B, ...) with IN_DIM features/row -> (B, OUT_DIM)."""
    x = jnp.asarray(obs_batch, jnp.float32)
    x = x.reshape(x.shape[0], -1)
    assert x.shape[1] == IN_DIM, f"expected {IN_DIM} features per row, got {x.shape}"
    return _forward(x, params)


def prepare_params(raw):
    """Pack raw f32 params: bf16 w1 + one lane-dense packed small array.

    raw: w1 (IN_DIM, HIDDEN), b1 (HIDDEN,), w2 (HIDDEN, HIDDEN), b2 (HIDDEN,),
         w3 (HIDDEN, OUT_DIM), b3 (OUT_DIM,). All f32, (in, out) layout.
    """
    w1 = raw["w1"].astype(jnp.bfloat16)

    small = jnp.zeros((_SMALL_ROWS, OUT_PAD), jnp.float32)
    small = small.at[0, 0:HIDDEN].set(raw["b1"])
    small = small.at[1, 0:HIDDEN].set(raw["b2"])
    small = small.at[2, 0:OUT_DIM].set(raw["b3"])
    small = small.at[_W2_ROW:_W2_ROW + HIDDEN, 0:HIDDEN].set(raw["w2"])
    small = small.at[_W3_ROW:_W3_ROW + HIDDEN, 0:OUT_DIM].set(raw["w3"])
    # TODO(synk): for a sequential inference loop, keep these params device-resident
    # across calls (or move the loop inside one pallas_call with a time grid axis)
    # instead of re-passing them; at B=1 dispatch + the w1 DMA dominate.
    return {"w1": w1, "small": small}


def init_raw_params(key, out_dim=OUT_DIM):
    """Deterministic init mimicking nn.Linear's U(-1/sqrt(fan_in), 1/sqrt(fan_in))."""
    ks = jax.random.split(key, 6)

    def linear(kw, kb, fan_in, fan_out):
        bound = 1.0 / jnp.sqrt(jnp.float32(fan_in))
        w = jax.random.uniform(kw, (fan_in, fan_out), jnp.float32, -bound, bound)
        b = jax.random.uniform(kb, (fan_out,), jnp.float32, -bound, bound)
        return w, b

    w1, b1 = linear(ks[0], ks[1], IN_DIM, HIDDEN)
    w2, b2 = linear(ks[2], ks[3], HIDDEN, HIDDEN)
    w3, b3 = linear(ks[4], ks[5], HIDDEN, out_dim)
    return {"w1": w1, "b1": b1, "w2": w2, "b2": b2, "w3": w3, "b3": b3}


def _reference(x, raw):
    """Pure-JAX reference mirroring the kernel's bf16 storage of w1 / bf16 x."""
    w1 = raw["w1"].astype(jnp.bfloat16).astype(jnp.float32)
    xb = x.astype(jnp.bfloat16).astype(jnp.float32)
    h1 = jnp.maximum(xb @ w1 + raw["b1"][None, :], 0.0)
    h2 = jnp.maximum(h1 @ raw["w2"] + raw["b2"][None, :], 0.0)
    return h2 @ raw["w3"] + raw["b3"][None, :]


if __name__ == "__main__":
    key = jax.random.PRNGKey(0)
    k_obs, k_batch, k_params = jax.random.split(key, 3)

    raw = init_raw_params(k_params)
    params = prepare_params(raw)

    # 1) Original module semantics: one observation of any shape, flattened to (1, 5600).
    obs = jax.random.normal(k_obs, (8, 700), dtype=jnp.float32)
    out1 = jax.block_until_ready(feedforward_nn(obs, params))
    ref1 = _reference(jnp.asarray(obs, jnp.float32).reshape(1, -1), raw)
    assert out1.shape == (1, OUT_DIM)
    assert jnp.allclose(out1, ref1, atol=1e-2, rtol=1e-2), "single-obs mismatch vs reference"

    # 2) Batched rollout path (amortizes the w1 load over many rows, 2 m tiles).
    obs_batch = jax.random.normal(k_batch, (16, IN_DIM), dtype=jnp.float32)
    out2 = jax.block_until_ready(feedforward_nn_batched(obs_batch, params))
    ref2 = _reference(obs_batch, raw)
    assert out2.shape == (16, OUT_DIM)
    assert jnp.allclose(out2, ref2, atol=1e-2, rtol=1e-2), "batched mismatch vs reference"

    print("KERNEL_OK")
</pallas_src>

<mosaic_0001>
module attributes {stable_mosaic.version = 11 : i64} {
  func.func @_mlp_kernel(%arg0: i32, %arg1: memref<8x5600xbf16, #tpu.memory_space<vmem>>, %arg2: memref<5600x64xbf16, #tpu.memory_space<vmem>>, %arg3: memref<200x128xf32, #tpu.memory_space<vmem>>, %arg4: memref<8x128xf32, #tpu.memory_space<vmem>>) attributes {dimension_semantics = [#tpu.dimension_semantics<parallel>], iteration_bounds = array<i64: 1>, scalar_prefetch = 0 : i64, scratch_operands = 0 : i64, tpu.core_type = #tpu.core_type<tc>, window_params = [{transform_indices = @transform_0, window_bounds = array<i64: 8, 5600>}, {pipeline_mode = #tpu.pipeline_mode<synchronous>, transform_indices = @transform_1, window_bounds = array<i64: 5600, 64>}, {pipeline_mode = #tpu.pipeline_mode<synchronous>, transform_indices = @transform_2, window_bounds = array<i64: 200, 128>}, {transform_indices = @transform_3, window_bounds = array<i64: 8, 128>}]} {
    %c0 = arith.constant 0 : index
    %c0_0 = arith.constant 0 : index
    %0 = vector.load %arg1[%c0, %c0_0] : memref<8x5600xbf16, #tpu.memory_space<vmem>>, vector<8x5600xbf16>
    %c0_1 = arith.constant 0 : index
    %c0_2 = arith.constant 0 : index
    %1 = vector.load %arg2[%c0_1, %c0_2] : memref<5600x64xbf16, #tpu.memory_space<vmem>>, vector<5600x64xbf16>
    %cst = arith.constant dense<0.000000e+00> : vector<8x64xf32>
    %2 = tpu.matmul %0, %1, %cst {dimension_numbers = #tpu.dot_dimension_numbers<[1], [0], [0], [1], [0, 0, 1, 1], [], []>} : vector<8x5600xbf16>, vector<5600x64xbf16>, vector<8x64xf32> -> vector<8x64xf32>
    %c0_3 = arith.constant 0 : index
    %c0_4 = arith.constant 0 : index
    %3 = vector.load %arg3[%c0_3, %c0_4] : memref<200x128xf32, #tpu.memory_space<vmem>>, vector<1x64xf32>
    %4 = vector.broadcast %3 : vector<1x64xf32> to vector<8x64xf32>
    %5 = arith.addf %2, %4 : vector<8x64xf32>
    %cst_5 = arith.constant 0.000000e+00 : f32
    %6 = vector.broadcast %cst_5 : f32 to vector<8x64xf32>
    %7 = arith.maximumf %5, %6 : vector<8x64xf32>
    %c8 = arith.constant 8 : index
    %c0_6 = arith.constant 0 : index
    %8 = vector.load %arg3[%c8, %c0_6] : memref<200x128xf32, #tpu.memory_space<vmem>>, vector<64x128xf32>
    %c1 = arith.constant 1 : index
    %c0_7 = arith.constant 0 : index
    %9 = vector.load %arg3[%c1, %c0_7] : memref<200x128xf32, #tpu.memory_space<vmem>>, vector<1x128xf32>
    %cst_8 = arith.constant dense<0.000000e+00> : vector<8x128xf32>
    %10 = tpu.matmul %7, %8, %cst_8 {dimension_numbers = #tpu.dot_dimension_numbers<[1], [0], [0], [1], [0, 0, 1, 1], [], []>} : vector<8x64xf32>, vector<64x128xf32>, vector<8x128xf32> -> vector<8x128xf32>
    %11 = vector.broadcast %9 : vector<1x128xf32> to vector<8x128xf32>
    %12 = arith.addf %10, %11 : vector<8x128xf32>
    %cst_9 = arith.constant 0.000000e+00 : f32
    %13 = vector.broadcast %cst_9 : f32 to vector<8x128xf32>
    %14 = arith.maximumf %12, %13 : vector<8x128xf32>
    %c72 = arith.constant 72 : index
    %c0_10 = arith.constant 0 : index
    %15 = vector.load %arg3[%c72, %c0_10] : memref<200x128xf32, #tpu.memory_space<vmem>>, vector<128x128xf32>
    %c2 = arith.constant 2 : index
    %c0_11 = arith.constant 0 : index
    %16 = vector.load %arg3[%c2, %c0_11] : memref<200x128xf32, #tpu.memory_space<vmem>>, vector<1x128xf32>
    %cst_12 = arith.constant dense<0.000000e+00> : vector<8x128xf32>
    %17 = tpu.matmul %14, %15, %cst_12 {dimension_numbers = #tpu.dot_dimension_numbers<[1], [0], [0], [1], [0, 0, 1, 1], [], []>} : vector<8x128xf32>, vector<128x128xf32>, vector<8x128xf32> -> vector<8x128xf32>
    %18 = vector.broadcast %16 : vector<1x128xf32> to vector<8x128xf32>
    %19 = arith.addf %17, %18 : vector<8x128xf32>
    %c0_13 = arith.constant 0 : index
    %c0_14 = arith.constant 0 : index
    %20 = vector.load %arg4[%c0_13, %c0_14] : memref<8x128xf32, #tpu.memory_space<vmem>>, vector<8x128xf32>
    tpu.vector_store %arg4[%c0_13, %c0_14], %19 {strides = array<i32>} : memref<8x128xf32, #tpu.memory_space<vmem>>, vector<8x128xf32>,
    return
  }
  func.func @transform_0(%arg0: i32) -> (i32, i32) {
    %c0_i32 = arith.constant 0 : i32
    %c0_i32_0 = arith.constant 0 : i32
    return %arg0, %c0_i32 : i32, i32
  }
  func.func @transform_1(%arg0: i32) -> (i32, i32) {
    %c0_i32 = arith.constant 0 : i32
    %c0_i32_0 = arith.constant 0 : i32
    %c0_i32_1 = arith.constant 0 : i32
    return %c0_i32, %c0_i32_0 : i32, i32
  }
  func.func @transform_2(%arg0: i32) -> (i32, i32) {
    %c0_i32 = arith.constant 0 : i32
    %c0_i32_0 = arith.constant 0 : i32
    %c0_i32_1 = arith.constant 0 : i32
    return %c0_i32, %c0_i32_0 : i32, i32
  }
  func.func @transform_3(%arg0: i32) -> (i32, i32) {
    %c0_i32 = arith.constant 0 : i32
    %c0_i32_0 = arith.constant 0 : i32
    return %arg0, %c0_i32 : i32, i32
  }
}

</mosaic_0001>

<bundles_post_ra>
// kernel: _forward.1
= control target key start
LH: loop header
LB: loop body
LE: loop exit
PB: predicated region body
PF: predicated region fallthrough
CT: control target
= control target key end

     0   :  { %vm2995_vm0 = vcmask 785408   ;;  %vm5404_vm1 = vmmov 0   ;;  %vm3893_vm2 = vcmask 523264   ;;  %s6677_s1 = inlined_call_operand.vmem [shape: bf16[5600,64], index: 1, kind: input, shape index: {}]   ;;  %s6678_s0 = inlined_call_operand.vmem [shape: bf16[8,5600], index: 0, kind: input, shape index: {}]   ;;  %s6679_s2 = inlined_call_operand.vmem [shape: f32[200,128], index: 2, kind: input, shape index: {}]   ;;  %s6680_s3 = inlined_call_operand.vmem [shape: f32[8,128], index: 3, kind: output, shape index: {}]  }
   0x1   :  { %v5008_v0 = vld [vmem:[%s6677_s1 + $0x78] sm:$0xff]   ;;  %v5012_v4 = vld [vmem:[%s6677_s1 + $0x70] sm:$0xff]   ;;  %v5016_v8 = vld [vmem:[%s6677_s1 + $0x68] sm:$0xff]  }
   0x2   :  { %v5009_v1 = vld [vmem:[%s6677_s1 + $0xf8] sm:$0xff]   ;;  %4463 = vmatprep.subr.bf16.mxu0 %v5008_v0  ;;  %v5013_v5 = vld [vmem:[%s6677_s1 + $0xf0] sm:$0xff]   ;;  %v5017_v9 = vld [vmem:[%s6677_s1 + $0xe8] sm:$0xff]  }
   0x3   :  { %v5010_v2 = vld [vmem:[%s6677_s1 + $0x38] sm:$0xff]   ;;  %4485 = vmatprep.subr.bf16.mxu1 %v5009_v1  ;;  %v5014_v6 = vld [vmem:[%s6677_s1 + $0x30] sm:$0xff]   ;;  %v5018_v10 = vld [vmem:[%s6677_s1 + $0x28] sm:$0xff]  }
   0x4   :  { %v5011_v3 = vld [vmem:[%s6677_s1 + $0xb8] sm:$0xff]   ;;  %4464 = vmatpush3.bf16.msra.mxu0 %v5010_v2  ;;  %v5015_v7 = vld [vmem:[%s6677_s1 + $0xb0] sm:$0xff]   ;;  %v5019_v11 = vld [vmem:[%s6677_s1 + $0xa8] sm:$0xff]  }
   0x5   :  { %4486 = vmatpush3.bf16.msra.mxu1 %v5011_v3  ;;  %4465 = vmatprep.subr.bf16.mxu0 %v5012_v4  ;;  %v5020_v12 = vld [vmem:[%s6677_s1 + $0x60] sm:$0xff]   ;;  %v5024_v16 = vld [vmem:[%s6677_s1 + $0x58] sm:$0xff]   ;;  %v5028_v20 = vld [vmem:[%s6677_s1 + $0x50] sm:$0xff]  }
   0x6   :  { %4487 = vmatprep.subr.bf16.mxu1 %v5013_v5  ;;  %v5021_v13 = vld [vmem:[%s6677_s1 + $0xe0] sm:$0xff]   ;;  %v5025_v17 = vld [vmem:[%s6677_s1 + $0xd8] sm:$0xff]   ;;  %v5029_v21 = vld [vmem:[%s6677_s1 + $0xd0] sm:$0xff]  }
   0x7   :  { %v5022_v14 = vld [vmem:[%s6677_s1 + $0x20] sm:$0xff]   ;;  %v5026_v18 = vld [vmem:[%s6677_s1 + $0x18] sm:$0xff]   ;;  %v5030_v22 = vld [vmem:[%s6677_s1 + $0x10] sm:$0xff]  }
   0x8   :  { %4466 = vmatpush3.bf16.msra.mxu0 %v5014_v6  ;;  %v5023_v15 = vld [vmem:[%s6677_s1 + $0xa0] sm:$0xff]   ;;  %v5027_v19 = vld [vmem:[%s6677_s1 + $0x98] sm:$0xff]   ;;  %v5031_v23 = vld [vmem:[%s6677_s1 + $0x90] sm:$0xff]  }
   0x9   :  { %4488 = vmatpush3.bf16.msra.mxu1 %v5015_v7  ;;  %4467 = vmatprep.subr.bf16.mxu0 %v5016_v8  ;;  %v5032_v24 = vld [vmem:[%s6677_s1 + $0x48] sm:$0xff]   ;;  %v5036_v28 = vld [vmem:[%s6677_s1 + $0x40] sm:$0xff]   ;;  %v5044_v38 = vld [vmem:[%s6677_s1 + $0x178] sm:$0xff]  }
   0xa   :  { %4489 = vmatprep.subr.bf16.mxu1 %v5017_v9  ;;  %v5033_v25 = vld [vmem:[%s6677_s1 + $0xc8] sm:$0xff]   ;;  %v5037_v29 = vld [vmem:[%s6677_s1 + $0xc0] sm:$0xff]   ;;  %v5045_v39 = vld [vmem:[%s6677_s1 + $0x1f8] sm:$0xff]  }
   0xb   :  { %v5034_v26 = vld [vmem:[%s6677_s1 + $0x8] sm:$0xff]   ;;  %v5038_v30 = vld [vmem:[%s6677_s1] sm:$0xff]   ;;  %v5046_v40 = vld [vmem:[%s6677_s1 + $0x138] sm:$0xff]  }
   0xc   :  { %4468 = vmatpush3.bf16.msra.mxu0 %v5018_v10  ;;  %v5035_v27 = vld [vmem:[%s6677_s1 + $0x88] sm:$0xff]   ;;  %v5039_v31 = vld [vmem:[%s6677_s1 + $0x80] sm:$0xff]   ;;  %v5047_v41 = vld [vmem:[%s6677_s1 + $0x1b8] sm:$0xff]  }
   0xd   :  { %4490 = vmatpush3.bf16.msra.mxu1 %v5019_v11  ;;  %4469 = vmatprep.subr.bf16.mxu0 %v5020_v12  ;;  %v15_v32 = vld [vmem:[%s6678_s0] sm:$0xff]  ;;  %v16_v33 = vld [vmem:[%s6678_s0 + $0x8] sm:$0xff]  ;;  %v5048_v42 = vld [vmem:[%s6677_s1 + $0x170] sm:$0xff]  }
   0xe   :  { %4491 = vmatprep.subr.bf16.mxu1 %v5021_v13  ;;  %v4065_v34 = vcombine.low %v15_v32, %v15_v32  ;;  %v4066_v35 = vcombine.high %v15_v32, %v15_v32  ;;  %v4067_v36 = vcombine.low %v16_v33, %v16_v33  ;;  %v4068_v37 = vcombine.high %v16_v33, %v16_v33  ;;  %v5049_v43 = vld [vmem:[%s6677_s1 + $0x1f0] sm:$0xff]   ;;  %v5052_v46 = vld [vmem:[%s6677_s1 + $0x168] sm:$0xff]   ;;  %v5056_v50 = vld [vmem:[%s6677_s1 + $0x160] sm:$0xff]  }
   0xf   :  { %v5050_v44 = vld [vmem:[%s6677_s1 + $0x130] sm:$0xff]   ;;  %v5053_v47 = vld [vmem:[%s6677_s1 + $0x1e8] sm:$0xff]   ;;  %v5057_v51 = vld [vmem:[%s6677_s1 + $0x1e0] sm:$0xff]  }
  0x10   :  { %4470 = vmatpush3.bf16.msra.mxu0 %v5022_v14  ;;  %3031 = vmatprep.mubr.bf16.mxu0 %v4066_v35  ;;  %v5051_v45 = vld [vmem:[%s6677_s1 + $0x1b0] sm:$0xff]   ;;  %v5054_v48 = vld [vmem:[%s6677_s1 + $0x128] sm:$0xff]   ;;  %v5058_v52 = vld [vmem:[%s6677_s1 + $0x120] sm:$0xff]  }
  0x11   :  { %4492 = vmatpush3.bf16.msra.mxu1 %v5023_v15  ;;  %4471 = vmatprep.subr.bf16.mxu0 %v5024_v16  ;;  %v5055_v49 = vld [vmem:[%s6677_s1 + $0x1a8] sm:$0xff]   ;;  %v5059_v53 = vld [vmem:[%s6677_s1 + $0x1a0] sm:$0xff]   ;;  %v5060_v54 = vld [vmem:[%s6677_s1 + $0x158] sm:$0xff]  }
  0x12   :  { %4493 = vmatprep.subr.bf16.mxu1 %v5025_v17  ;;  %3071 = vmatprep.mubr.bf16.mxu1 %v4068_v37  ;;  %v5061_v55 = vld [vmem:[%s6677_s1 + $0x1d8] sm:$0xff]   ;;  %v5064_v58 = vld [vmem:[%s6677_s1 + $0x150] sm:$0xff]   ;;  %v5068_v62 = vld [vmem:[%s6677_s1 + $0x148] sm:$0xff]  }
  0x13   :  { %v5062_v56 = vld [vmem:[%s6677_s1 + $0x118] sm:$0xff]   ;;  %v5065_v59 = vld [vmem:[%s6677_s1 + $0x1d0] sm:$0xff]   ;;  %v5069_v63 = vld [vmem:[%s6677_s1 + $0x1c8] sm:$0xff]  }
  0x14   :  { %4472 = vmatpush3.bf16.msra.mxu0 %v5026_v18  ;;  %v5063_v57 = vld [vmem:[%s6677_s1 + $0x198] sm:$0xff]   ;;  %v5066_v60 = vld [vmem:[%s6677_s1 + $0x110] sm:$0xff]   ;;  %v5070_v0 = vld [vmem:[%s6677_s1 + $0x108] sm:$0xff]  }
  0x15   :  { %4494 = vmatpush3.bf16.msra.mxu1 %v5027_v19  ;;  %4473 = vmatprep.subr.bf16.mxu0 %v5028_v20  ;;  %v5067_v61 = vld [vmem:[%s6677_s1 + $0x190] sm:$0xff]   ;;  %v5071_v1 = vld [vmem:[%s6677_s1 + $0x188] sm:$0xff]   ;;  %v5072_v2 = vld [vmem:[%s6677_s1 + $0x140] sm:$0xff]  }
  0x16   :  { %4495 = vmatprep.subr.bf16.mxu1 %v5029_v21  ;;  %v5073_v3 = vld [vmem:[%s6677_s1 + $0x1c0] sm:$0xff]   ;;  %v17_v6 = vld [vmem:[%s6678_s0 + $0x10] sm:$0xff]  ;;  %v18_v9 = vld [vmem:[%s6678_s0 + $0x18] sm:$0xff] }
  0x17   :  { %v5074_v4 = vld [vmem:[%s6677_s1 + $0x100] sm:$0xff]   ;;  %v4069_v7 = vcombine.low %v17_v6, %v17_v6  ;;  %v4070_v8 = vcombine.high %v17_v6, %v17_v6  ;;  %v4071_v10 = vcombine.low %v18_v9, %v18_v9  ;;  %v4072_v11 = vcombine.high %v18_v9, %v18_v9  ;;  %v5080_v12 = vld [vmem:[%s6677_s1 + $0x278] sm:$0xff]   ;;  %v5084_v16 = vld [vmem:[%s6677_s1 + $0x270] sm:$0xff]  }
  0x18   :  { %4474 = vmatpush3.bf16.msra.mxu0 %v5030_v22  ;;  %v5075_v5 = vld [vmem:[%s6677_s1 + $0x180] sm:$0xff]   ;;  %v5081_v13 = vld [vmem:[%s6677_s1 + $0x2f8] sm:$0xff]   ;;  %v5085_v17 = vld [vmem:[%s6677_s1 + $0x2f0] sm:$0xff]  }
  0x19   :  { %4496 = vmatpush3.bf16.msra.mxu1 %v5031_v23  ;;  %4475 = vmatprep.subr.bf16.mxu0 %v5032_v24  ;;  %v5082_v14 = vld [vmem:[%s6677_s1 + $0x238] sm:$0xff]   ;;  %v5086_v18 = vld [vmem:[%s6677_s1 + $0x230] sm:$0xff]   ;;  %v5088_v20 = vld [vmem:[%s6677_s1 + $0x268] sm:$0xff]  }
  0x1a   :  { %4497 = vmatprep.subr.bf16.mxu1 %v5033_v25  ;;  %v5083_v15 = vld [vmem:[%s6677_s1 + $0x2b8] sm:$0xff]   ;;  %v5087_v19 = vld [vmem:[%s6677_s1 + $0x2b0] sm:$0xff]   ;;  %v5089_v21 = vld [vmem:[%s6677_s1 + $0x2e8] sm:$0xff]  }
  0x1b   :  { %v5090_v22 = vld [vmem:[%s6677_s1 + $0x228] sm:$0xff]   ;;  %v5092_v24 = vld [vmem:[%s6677_s1 + $0x260] sm:$0xff]   ;;  %v5100_v32 = vld [vmem:[%s6677_s1 + $0x250] sm:$0xff]  }
  0x1c   :  { %4476 = vmatpush3.bf16.msra.mxu0 %v5034_v26  ;;  %v5091_v23 = vld [vmem:[%s6677_s1 + $0x2a8] sm:$0xff]   ;;  %v5093_v25 = vld [vmem:[%s6677_s1 + $0x2e0] sm:$0xff]   ;;  %v5101_v33 = vld [vmem:[%s6677_s1 + $0x2d0] sm:$0xff]  }
  0x1d   :  { %4498 = vmatpush3.bf16.msra.mxu1 %v5035_v27  ;;  %4477 = vmatprep.subr.bf16.mxu0 %v5036_v28  ;;  %v5094_v26 = vld [vmem:[%s6677_s1 + $0x220] sm:$0xff]   ;;  %v5096_v28 = vld [vmem:[%s6677_s1 + $0x258] sm:$0xff]   ;;  %v5103_v35 = vld [vmem:[%s6677_s1 + $0x290] sm:$0xff]  }
  0x1e   :  { %4499 = vmatprep.subr.bf16.mxu1 %v5037_v29  ;;  %v5095_v27 = vld [vmem:[%s6677_s1 + $0x2a0] sm:$0xff]   ;;  %v5097_v29 = vld [vmem:[%s6677_s1 + $0x2d8] sm:$0xff]   ;;  %v5105_v37 = vld [vmem:[%s6677_s1 + $0x2c8] sm:$0xff]  }
  0x1f   :  { %v5136_v6 = vld [vmem:[%s6677_s1 + $0x350] sm:$0xff]  }
  0x20   :  { %4478 = vmatpush3.bf16.msra.mxu0 %v5038_v30  ;;  %v5098_v30 = vld [vmem:[%s6677_s1 + $0x218] sm:$0xff]   ;;  %v5139_v9 = vld [vmem:[%s6677_s1 + $0x390] sm:$0xff]  }
  0x21   :  { %4500 = vmatpush3.bf16.msra.mxu1 %v5039_v31  ;;  %4507 = vmatprep.subr.bf16.mxu0 %v5044_v38  ;;  %v5099_v31 = vld [vmem:[%s6677_s1 + $0x298] sm:$0xff]   ;;  %v5106_v38 = vld [vmem:[%s6677_s1 + $0x208] sm:$0xff]  }
  0x22   :  { %4529 = vmatprep.subr.bf16.mxu1 %v5045_v39  ;;  %v5107_v39 = vld [vmem:[%s6677_s1 + $0x288] sm:$0xff]  }
  0x23   :  { %3032 = vmatmul.mubr.bf16.vlgmr.msra.gmra.mxu0 %v4065_v34  ;;  %v5102_v34 = vld [vmem:[%s6677_s1 + $0x210] sm:$0xff]  }
  0x24   :  { %3072 = vmatmul.mubr.bf16.vlgmr.msra.gmra.mxu1 %v4067_v36  ;;  %4508 = vmatpush3.bf16.msra.mxu0 %v5046_v40  ;;  %v5104_v36 = vld [vmem:[%s6677_s1 + $0x248] sm:$0xff]   ;;  %v5108_v40 = vld [vmem:[%s6677_s1 + $0x240] sm:$0xff]  }
  0x25   :  { %4530 = vmatpush3.bf16.msra.mxu1 %v5047_v41  ;;  %4509 = vmatprep.subr.bf16.mxu0 %v5048_v42  ;;  %v5109_v41 = vld [vmem:[%s6677_s1 + $0x2c0] sm:$0xff]  }
  0x26   :  { %4531 = vmatprep.subr.bf16.mxu1 %v5049_v43  ;;  %3111 = vmatprep.mubr.bf16.mxu0 %v4070_v8  ;;  %v5110_v42 = vld [vmem:[%s6677_s1 + $0x200] sm:$0xff]   ;;  %v5138_v8 = vld [vmem:[%s6677_s1 + $0x310] sm:$0xff]  }
  0x27   :  { %3151 = vmatprep.mubr.bf16.mxu1 %v4072_v11  ;;  %v5111_v43 = vld [vmem:[%s6677_s1 + $0x280] sm:$0xff]   ;;  %v5141_v11 = vld [vmem:[%s6677_s1 + $0x3c8] sm:$0xff]  }
  0x28   :  { %4510 = vmatpush3.bf16.msra.mxu0 %v5050_v44  ;;  %v19_v44 = vld [vmem:[%s6678_s0 + $0x20] sm:$0xff] }
  0x29   :  { %4532 = vmatpush3.bf16.msra.mxu1 %v5051_v45  ;;  %4511 = vmatprep.subr.bf16.mxu0 %v5052_v46  ;;  %v20_v45 = vld [vmem:[%s6678_s0 + $0x28] sm:$0xff]  ;;  %v4073_v46 = vcombine.low %v19_v44, %v19_v44 }
  0x2a   :  { %4533 = vmatprep.subr.bf16.mxu1 %v5053_v47  ;;  %v4074_v47 = vcombine.high %v19_v44, %v19_v44  ;;  %v5172_v44 = vld [vmem:[%s6677_s1 + $0x450] sm:$0xff]  }
  0x2c   :  { %4512 = vmatpush3.bf16.msra.mxu0 %v5054_v48  ;;  %v4075_v48 = vcombine.low %v20_v45, %v20_v45 }
  0x2d   :  { %4534 = vmatpush3.bf16.msra.mxu1 %v5055_v49  ;;  %4513 = vmatprep.subr.bf16.mxu0 %v5056_v50  ;;  %v4076_v49 = vcombine.high %v20_v45, %v20_v45  ;;  %v5116_v50 = vld [vmem:[%s6677_s1 + $0x378] sm:$0xff]   ;;  %v5173_v45 = vld [vmem:[%s6677_s1 + $0x4d0] sm:$0xff]  }
  0x2e   :  { %4535 = vmatprep.subr.bf16.mxu1 %v5057_v51  ;;  %v5117_v51 = vld [vmem:[%s6677_s1 + $0x3f8] sm:$0xff]  }
  0x30   :  { %4514 = vmatpush3.bf16.msra.mxu0 %v5058_v52  ;;  %v5118_v52 = vld [vmem:[%s6677_s1 + $0x338] sm:$0xff]  }
  0x31   :  { %4536 = vmatpush3.bf16.msra.mxu1 %v5059_v53  ;;  %4515 = vmatprep.subr.bf16.mxu0 %v5060_v54  ;;  %v5119_v53 = vld [vmem:[%s6677_s1 + $0x3b8] sm:$0xff]   ;;  %v5120_v54 = vld [vmem:[%s6677_s1 + $0x370] sm:$0xff]  }
  0x32   :  { %4537 = vmatprep.subr.bf16.mxu1 %v5061_v55  ;;  %v5121_v55 = vld [vmem:[%s6677_s1 + $0x3f0] sm:$0xff]  }
  0x34   :  { %4516 = vmatpush3.bf16.msra.mxu0 %v5062_v56  ;;  %v5122_v56 = vld [vmem:[%s6677_s1 + $0x330] sm:$0xff]  }
  0x35   :  { %4538 = vmatpush3.bf16.msra.mxu1 %v5063_v57  ;;  %4517 = vmatprep.subr.bf16.mxu0 %v5064_v58  ;;  %v5123_v57 = vld [vmem:[%s6677_s1 + $0x3b0] sm:$0xff]   ;;  %v5124_v58 = vld [vmem:[%s6677_s1 + $0x368] sm:$0xff]  }
  0x36   :  { %4539 = vmatprep.subr.bf16.mxu1 %v5065_v59  ;;  %v5125_v59 = vld [vmem:[%s6677_s1 + $0x3e8] sm:$0xff]  }
  0x38   :  { %4518 = vmatpush3.bf16.msra.mxu0 %v5066_v60  ;;  %v5126_v60 = vld [vmem:[%s6677_s1 + $0x328] sm:$0xff]  }
  0x39   :  { %4540 = vmatpush3.bf16.msra.mxu1 %v5067_v61  ;;  %4519 = vmatprep.subr.bf16.mxu0 %v5068_v62  ;;  %v5127_v61 = vld [vmem:[%s6677_s1 + $0x3a8] sm:$0xff]   ;;  %v5128_v62 = vld [vmem:[%s6677_s1 + $0x360] sm:$0xff]  }
  0x3a   :  { %4541 = vmatprep.subr.bf16.mxu1 %v5069_v63  ;;  %v5129_v63 = vld [vmem:[%s6677_s1 + $0x3e0] sm:$0xff]  }
  0x3c   :  { %4520 = vmatpush3.bf16.msra.mxu0 %v5070_v0  ;;  %v5130_v0 = vld [vmem:[%s6677_s1 + $0x320] sm:$0xff]  }
  0x3d   :  { %4542 = vmatpush3.bf16.msra.mxu1 %v5071_v1  ;;  %4521 = vmatprep.subr.bf16.mxu0 %v5072_v2  ;;  %v5131_v1 = vld [vmem:[%s6677_s1 + $0x3a0] sm:$0xff]   ;;  %v5132_v2 = vld [vmem:[%s6677_s1 + $0x358] sm:$0xff]  }
  0x3e   :  { %4543 = vmatprep.subr.bf16.mxu1 %v5073_v3  ;;  %v5133_v3 = vld [vmem:[%s6677_s1 + $0x3d8] sm:$0xff]  }
  0x40   :  { %4522 = vmatpush3.bf16.msra.mxu0 %v5074_v4  ;;  %v5134_v4 = vld [vmem:[%s6677_s1 + $0x318] sm:$0xff]  }
  0x41   :  { %4544 = vmatpush3.bf16.msra.mxu1 %v5075_v5  ;;  %4551 = vmatprep.subr.bf16.mxu0 %v5080_v12  ;;  %v5135_v5 = vld [vmem:[%s6677_s1 + $0x398] sm:$0xff]   ;;  %v5142_v12 = vld [vmem:[%s6677_s1 + $0x308] sm:$0xff]  }
  0x42   :  { %4573 = vmatprep.subr.bf16.mxu1 %v5081_v13  ;;  %v5143_v13 = vld [vmem:[%s6677_s1 + $0x388] sm:$0xff]  }
  0x43   :  { %3112 = vmatmul.mubr.bf16.vlgmr.msra.gmra.mxu0 %v4069_v7  ;;  %v5137_v7 = vld [vmem:[%s6677_s1 + $0x3d0] sm:$0xff]  }
  0x44   :  { %3152 = vmatmul.mubr.bf16.vlgmr.msra.gmra.mxu1 %v4071_v10  ;;  %4552 = vmatpush3.bf16.msra.mxu0 %v5082_v14  ;;  %v5140_v10 = vld [vmem:[%s6677_s1 + $0x348] sm:$0xff]   ;;  %v5144_v14 = vld [vmem:[%s6677_s1 + $0x340] sm:$0xff]  }
  0x45   :  { %4574 = vmatpush3.bf16.msra.mxu1 %v5083_v15  ;;  %4553 = vmatprep.subr.bf16.mxu0 %v5084_v16  ;;  %v5145_v15 = vld [vmem:[%s6677_s1 + $0x3c0] sm:$0xff]  }
  0x46   :  { %4575 = vmatprep.subr.bf16.mxu1 %v5085_v17  ;;  %3191 = vmatprep.mubr.bf16.mxu0 %v4074_v47  ;;  %v5146_v16 = vld [vmem:[%s6677_s1 + $0x300] sm:$0xff]   ;;  %v5175_v47 = vld [vmem:[%s6677_s1 + $0x490] sm:$0xff]  }
  0x47   :  { %3231 = vmatprep.mubr.bf16.mxu1 %v4076_v49  ;;  %v5147_v17 = vld [vmem:[%s6677_s1 + $0x380] sm:$0xff]   ;;  %v5177_v49 = vld [vmem:[%s6677_s1 + $0x4c8] sm:$0xff]  }
  0x48   :  { %4554 = vmatpush3.bf16.msra.mxu0 %v5086_v18  ;;  %v21_v18 = vld [vmem:[%s6678_s0 + $0x30] sm:$0xff] }
  0x49   :  { %4576 = vmatpush3.bf16.msra.mxu1 %v5087_v19  ;;  %4555 = vmatprep.subr.bf16.mxu0 %v5088_v20  ;;  %v22_v19 = vld [vmem:[%s6678_s0 + $0x38] sm:$0xff]  ;;  %v4077_v20 = vcombine.low %v21_v18, %v21_v18 }
  0x4a   :  { %4577 = vmatprep.subr.bf16.mxu1 %v5089_v21  ;;  %v4078_v21 = vcombine.high %v21_v18, %v21_v18  ;;  %v5208_v18 = vld [vmem:[%s6677_s1 + $0x550] sm:$0xff]  }
  0x4c   :  { %4556 = vmatpush3.bf16.msra.mxu0 %v5090_v22  ;;  %v4079_v22 = vcombine.low %v22_v19, %v22_v19 }
  0x4d   :  { %4578 = vmatpush3.bf16.msra.mxu1 %v5091_v23  ;;  %4557 = vmatprep.subr.bf16.mxu0 %v5092_v24  ;;  %v5152_v23 = vld [vmem:[%s6677_s1 + $0x478] sm:$0xff]   ;;  %v4080_v24 = vcombine.high %v22_v19, %v22_v19  ;;  %v5209_v19 = vld [vmem:[%s6677_s1 + $0x5d0] sm:$0xff]  }
  0x4e   :  { %4579 = vmatprep.subr.bf16.mxu1 %v5093_v25  ;;  %v5153_v25 = vld [vmem:[%s6677_s1 + $0x4f8] sm:$0xff]  }
  0x50   :  { %4558 = vmatpush3.bf16.msra.mxu0 %v5094_v26  ;;  %v5154_v26 = vld [vmem:[%s6677_s1 + $0x438] sm:$0xff]  }
  0x51   :  { %4580 = vmatpush3.bf16.msra.mxu1 %v5095_v27  ;;  %4559 = vmatprep.subr.bf16.mxu0 %v5096_v28  ;;  %v5155_v27 = vld [vmem:[%s6677_s1 + $0x4b8] sm:$0xff]   ;;  %v5156_v28 = vld [vmem:[%s6677_s1 + $0x470] sm:$0xff]  }
  0x52   :  { %4581 = vmatprep.subr.bf16.mxu1 %v5097_v29  ;;  %v5157_v29 = vld [vmem:[%s6677_s1 + $0x4f0] sm:$0xff]  }
  0x54   :  { %4560 = vmatpush3.bf16.msra.mxu0 %v5098_v30  ;;  %v5158_v30 = vld [vmem:[%s6677_s1 + $0x430] sm:$0xff]  }
  0x55   :  { %4582 = vmatpush3.bf16.msra.mxu1 %v5099_v31  ;;  %4561 = vmatprep.subr.bf16.mxu0 %v5100_v32  ;;  %v5159_v31 = vld [vmem:[%s6677_s1 + $0x4b0] sm:$0xff]   ;;  %v5160_v32 = vld [vmem:[%s6677_s1 + $0x468] sm:$0xff]  }
  0x56   :  { %4583 = vmatprep.subr.bf16.mxu1 %v5101_v33  ;;  %v5161_v33 = vld [vmem:[%s6677_s1 + $0x4e8] sm:$0xff]  }
  0x58   :  { %4562 = vmatpush3.bf16.msra.mxu0 %v5102_v34  ;;  %v5162_v34 = vld [vmem:[%s6677_s1 + $0x428] sm:$0xff]  }
  0x59   :  { %4584 = vmatpush3.bf16.msra.mxu1 %v5103_v35  ;;  %4563 = vmatprep.subr.bf16.mxu0 %v5104_v36  ;;  %v5163_v35 = vld [vmem:[%s6677_s1 + $0x4a8] sm:$0xff]   ;;  %v5164_v36 = vld [vmem:[%s6677_s1 + $0x460] sm:$0xff]  }
  0x5a   :  { %4585 = vmatprep.subr.bf16.mxu1 %v5105_v37  ;;  %v5165_v37 = vld [vmem:[%s6677_s1 + $0x4e0] sm:$0xff]  }
  0x5c   :  { %4564 = vmatpush3.bf16.msra.mxu0 %v5106_v38  ;;  %v5166_v38 = vld [vmem:[%s6677_s1 + $0x420] sm:$0xff]  }
  0x5d   :  { %4586 = vmatpush3.bf16.msra.mxu1 %v5107_v39  ;;  %4565 = vmatprep.subr.bf16.mxu0 %v5108_v40  ;;  %v5167_v39 = vld [vmem:[%s6677_s1 + $0x4a0] sm:$0xff]   ;;  %v5168_v40 = vld [vmem:[%s6677_s1 + $0x458] sm:$0xff]  }
  0x5e   :  { %4587 = vmatprep.subr.bf16.mxu1 %v5109_v41  ;;  %v5169_v41 = vld [vmem:[%s6677_s1 + $0x4d8] sm:$0xff]  }
  0x60   :  { %4566 = vmatpush3.bf16.msra.mxu0 %v5110_v42  ;;  %v5170_v42 = vld [vmem:[%s6677_s1 + $0x418] sm:$0xff]  }
  0x61   :  { %4588 = vmatpush3.bf16.msra.mxu1 %v5111_v43  ;;  %4595 = vmatprep.subr.bf16.mxu0 %v5116_v50  ;;  %v5171_v43 = vld [vmem:[%s6677_s1 + $0x498] sm:$0xff]   ;;  %v5178_v50 = vld [vmem:[%s6677_s1 + $0x408] sm:$0xff]  }
  0x62   :  { %4617 = vmatprep.subr.bf16.mxu1 %v5117_v51  ;;  %v5179_v51 = vld [vmem:[%s6677_s1 + $0x488] sm:$0xff]  }
  0x63   :  { %3192 = vmatmul.mubr.bf16.vlgmr.msra.gmra.mxu0 %v4073_v46  ;;  %v5174_v46 = vld [vmem:[%s6677_s1 + $0x410] sm:$0xff]  }
  0x64   :  { %3232 = vmatmul.mubr.bf16.vlgmr.msra.gmra.mxu1 %v4075_v48  ;;  %4596 = vmatpush3.bf16.msra.mxu0 %v5118_v52  ;;  %v5176_v48 = vld [vmem:[%s6677_s1 + $0x448] sm:$0xff]   ;;  %v5180_v52 = vld [vmem:[%s6677_s1 + $0x440] sm:$0xff]  }
  0x65   :  { %4618 = vmatpush3.bf16.msra.mxu1 %v5119_v53  ;;  %4597 = vmatprep.subr.bf16.mxu0 %v5120_v54  ;;  %v5181_v53 = vld [vmem:[%s6677_s1 + $0x4c0] sm:$0xff]  }
  0x66   :  { %4619 = vmatprep.subr.bf16.mxu1 %v5121_v55  ;;  %3271 = vmatprep.mubr.bf16.mxu0 %v4078_v21  ;;  %v5182_v54 = vld [vmem:[%s6677_s1 + $0x400] sm:$0xff]   ;;  %v5211_v21 = vld [vmem:[%s6677_s1 + $0x590] sm:$0xff]  }
  0x67   :  { %3311 = vmatprep.mubr.bf16.mxu1 %v4080_v24  ;;  %v5183_v55 = vld [vmem:[%s6677_s1 + $0x480] sm:$0xff]   ;;  %v5214_v24 = vld [vmem:[%s6677_s1 + $0x508] sm:$0xff]  }
  0x68   :  { %4598 = vmatpush3.bf16.msra.mxu0 %v5122_v56  ;;  %v23_v56 = vld [vmem:[%s6678_s0 + $0x40] sm:$0xff] }
  0x69   :  { %4620 = vmatpush3.bf16.msra.mxu1 %v5123_v57  ;;  %4599 = vmatprep.subr.bf16.mxu0 %v5124_v58  ;;  %v4081_v57 = vcombine.low %v23_v56, %v23_v56  ;;  %v4082_v58 = vcombine.high %v23_v56, %v23_v56  ;;  %v5244_v56 = vld [vmem:[%s6677_s1 + $0x650] sm:$0xff]  }
  0x6a   :  { %4621 = vmatprep.subr.bf16.mxu1 %v5125_v59  ;;  %v24_v59 = vld [vmem:[%s6678_s0 + $0x48] sm:$0xff] }
  0x6c   :  { %4600 = vmatpush3.bf16.msra.mxu0 %v5126_v60  ;;  %v4083_v60 = vcombine.low %v24_v59, %v24_v59 }
  0x6d   :  { %4622 = vmatpush3.bf16.msra.mxu1 %v5127_v61  ;;  %4601 = vmatprep.subr.bf16.mxu0 %v5128_v62  ;;  %v4084_v61 = vcombine.high %v24_v59, %v24_v59  ;;  %v5188_v62 = vld [vmem:[%s6677_s1 + $0x578] sm:$0xff]   ;;  %v5247_v59 = vld [vmem:[%s6677_s1 + $0x690] sm:$0xff]  }
  0x6e   :  { %4623 = vmatprep.subr.bf16.mxu1 %v5129_v63  ;;  %v5189_v63 = vld [vmem:[%s6677_s1 + $0x5f8] sm:$0xff]  }
  0x70   :  { %4602 = vmatpush3.bf16.msra.mxu0 %v5130_v0  ;;  %v5190_v0 = vld [vmem:[%s6677_s1 + $0x538] sm:$0xff]  }
  0x71   :  { %4624 = vmatpush3.bf16.msra.mxu1 %v5131_v1  ;;  %4603 = vmatprep.subr.bf16.mxu0 %v5132_v2  ;;  %v5191_v1 = vld [vmem:[%s6677_s1 + $0x5b8] sm:$0xff]   ;;  %v5192_v2 = vld [vmem:[%s6677_s1 + $0x570] sm:$0xff]  }
  0x72   :  { %4625 = vmatprep.subr.bf16.mxu1 %v5133_v3  ;;  %v5193_v3 = vld [vmem:[%s6677_s1 + $0x5f0] sm:$0xff]  }
  0x74   :  { %4604 = vmatpush3.bf16.msra.mxu0 %v5134_v4  ;;  %v5194_v4 = vld [vmem:[%s6677_s1 + $0x530] sm:$0xff]  }
  0x75   :  { %4626 = vmatpush3.bf16.msra.mxu1 %v5135_v5  ;;  %4605 = vmatprep.subr.bf16.mxu0 %v5136_v6  ;;  %v5195_v5 = vld [vmem:[%s6677_s1 + $0x5b0] sm:$0xff]   ;;  %v5196_v6 = vld [vmem:[%s6677_s1 + $0x568] sm:$0xff]  }
  0x76   :  { %4627 = vmatprep.subr.bf16.mxu1 %v5137_v7  ;;  %v5197_v7 = vld [vmem:[%s6677_s1 + $0x5e8] sm:$0xff]  }
  0x78   :  { %4606 = vmatpush3.bf16.msra.mxu0 %v5138_v8  ;;  %v5198_v8 = vld [vmem:[%s6677_s1 + $0x528] sm:$0xff]  }
  0x79   :  { %4628 = vmatpush3.bf16.msra.mxu1 %v5139_v9  ;;  %4607 = vmatprep.subr.bf16.mxu0 %v5140_v10  ;;  %v5199_v9 = vld [vmem:[%s6677_s1 + $0x5a8] sm:$0xff]   ;;  %v5200_v10 = vld [vmem:[%s6677_s1 + $0x560] sm:$0xff]  }
  0x7a   :  { %4629 = vmatprep.subr.bf16.mxu1 %v5141_v11  ;;  %v5201_v11 = vld [vmem:[%s6677_s1 + $0x5e0] sm:$0xff]  }
  0x7c   :  { %4608 = vmatpush3.bf16.msra.mxu0 %v5142_v12  ;;  %v5202_v12 = vld [vmem:[%s6677_s1 + $0x520] sm:$0xff]  }
  0x7d   :  { %4630 = vmatpush3.bf16.msra.mxu1 %v5143_v13  ;;  %4609 = vmatprep.subr.bf16.mxu0 %v5144_v14  ;;  %v5203_v13 = vld [vmem:[%s6677_s1 + $0x5a0] sm:$0xff]   ;;  %v5204_v14 = vld [vmem:[%s6677_s1 + $0x558] sm:$0xff]  }
  0x7e   :  { %4631 = vmatprep.subr.bf16.mxu1 %v5145_v15  ;;  %v5205_v15 = vld [vmem:[%s6677_s1 + $0x5d8] sm:$0xff]  }
  0x80   :  { %4610 = vmatpush3.bf16.msra.mxu0 %v5146_v16  ;;  %v5206_v16 = vld [vmem:[%s6677_s1 + $0x518] sm:$0xff]  }
  0x81   :  { %4632 = vmatpush3.bf16.msra.mxu1 %v5147_v17  ;;  %4639 = vmatprep.subr.bf16.mxu0 %v5152_v23  ;;  %v5207_v17 = vld [vmem:[%s6677_s1 + $0x598] sm:$0xff]   ;;  %v5213_v23 = vld [vmem:[%s6677_s1 + $0x5c8] sm:$0xff]  }
  0x82   :  { %4661 = vmatprep.subr.bf16.mxu1 %v5153_v25  ;;  %v5215_v25 = vld [vmem:[%s6677_s1 + $0x588] sm:$0xff]  }
  0x83   :  { %3272 = vmatmul.mubr.bf16.vlgmr.msra.gmra.mxu0 %v4077_v20  ;;  %v5210_v20 = vld [vmem:[%s6677_s1 + $0x510] sm:$0xff]  }
  0x84   :  { %3312 = vmatmul.mubr.bf16.vlgmr.msra.gmra.mxu1 %v4079_v22  ;;  %4640 = vmatpush3.bf16.msra.mxu0 %v5154_v26  ;;  %v5212_v22 = vld [vmem:[%s6677_s1 + $0x548] sm:$0xff]   ;;  %v5216_v26 = vld [vmem:[%s6677_s1 + $0x540] sm:$0xff]  }
  0x85   :  { %4662 = vmatpush3.bf16.msra.mxu1 %v5155_v27  ;;  %4641 = vmatprep.subr.bf16.mxu0 %v5156_v28  ;;  %v5217_v27 = vld [vmem:[%s6677_s1 + $0x5c0] sm:$0xff]  }
  0x86   :  { %4663 = vmatprep.subr.bf16.mxu1 %v5157_v29  ;;  %3351 = vmatprep.mubr.bf16.mxu0 %v4082_v58  ;;  %v5218_v28 = vld [vmem:[%s6677_s1 + $0x500] sm:$0xff]   ;;  %v5246_v58 = vld [vmem:[%s6677_s1 + $0x610] sm:$0xff]  }
  0x87   :  { %3391 = vmatprep.mubr.bf16.mxu1 %v4084_v61  ;;  %v5219_v29 = vld [vmem:[%s6677_s1 + $0x580] sm:$0xff]   ;;  %v5249_v61 = vld [vmem:[%s6677_s1 + $0x6c8] sm:$0xff]  }
  0x88   :  { %4642 = vmatpush3.bf16.msra.mxu0 %v5158_v30  ;;  %v25_v30 = vld [vmem:[%s6678_s0 + $0x50] sm:$0xff] }
  0x89   :  { %4664 = vmatpush3.bf16.msra.mxu1 %v5159_v31  ;;  %4643 = vmatprep.subr.bf16.mxu0 %v5160_v32  ;;  %v26_v31 = vld [vmem:[%s6678_s0 + $0x58] sm:$0xff]  ;;  %v4085_v32 = vcombine.low %v25_v30, %v25_v30 }
  0x8a   :  { %4665 = vmatprep.subr.bf16.mxu1 %v5161_v33  ;;  %v4086_v33 = vcombine.high %v25_v30, %v25_v30  ;;  %v5267_v30 = vld [vmem:[%s6677_s1 + $0x7b0] sm:$0xff]  }
  0x8c   :  { %4644 = vmatpush3.bf16.msra.mxu0 %v5162_v34  ;;  %v4087_v34 = vcombine.low %v26_v31, %v26_v31 }
  0x8d   :  { %4666 = vmatpush3.bf16.msra.mxu1 %v5163_v35  ;;  %4645 = vmatprep.subr.bf16.mxu0 %v5164_v36  ;;  %v4088_v35 = vcombine.high %v26_v31, %v26_v31  ;;  %v5224_v36 = vld [vmem:[%s6677_s1 + $0x678] sm:$0xff]   ;;  %v5268_v31 = vld [vmem:[%s6677_s1 + $0x768] sm:$0xff]  }
  0x8e   :  { %4667 = vmatprep.subr.bf16.mxu1 %v5165_v37  ;;  %v5225_v37 = vld [vmem:[%s6677_s1 + $0x6f8] sm:$0xff]  }
  0x90   :  { %4646 = vmatpush3.bf16.msra.mxu0 %v5166_v38  ;;  %v5226_v38 = vld [vmem:[%s6677_s1 + $0x638] sm:$0xff]  }
  0x91   :  { %4668 = vmatpush3.bf16.msra.mxu1 %v5167_v39  ;;  %4647 = vmatprep.subr.bf16.mxu0 %v5168_v40  ;;  %v5227_v39 = vld [vmem:[%s6677_s1 + $0x6b8] sm:$0xff]   ;;  %v5228_v40 = vld [vmem:[%s6677_s1 + $0x670] sm:$0xff]  }
  0x92   :  { %4669 = vmatprep.subr.bf16.mxu1 %v5169_v41  ;;  %v5229_v41 = vld [vmem:[%s6677_s1 + $0x6f0] sm:$0xff]  }
  0x94   :  { %4648 = vmatpush3.bf16.msra.mxu0 %v5170_v42  ;;  %v5230_v42 = vld [vmem:[%s6677_s1 + $0x630] sm:$0xff]  }
  0x95   :  { %4670 = vmatpush3.bf16.msra.mxu1 %v5171_v43  ;;  %4649 = vmatprep.subr.bf16.mxu0 %v5172_v44  ;;  %v5231_v43 = vld [vmem:[%s6677_s1 + $0x6b0] sm:$0xff]   ;;  %v5232_v44 = vld [vmem:[%s6677_s1 + $0x668] sm:$0xff]  }
  0x96   :  { %4671 = vmatprep.subr.bf16.mxu1 %v5173_v45  ;;  %v5233_v45 = vld [vmem:[%s6677_s1 + $0x6e8] sm:$0xff]  }
  0x98   :  { %4650 = vmatpush3.bf16.msra.mxu0 %v5174_v46  ;;  %v5234_v46 = vld [vmem:[%s6677_s1 + $0x628] sm:$0xff]  }
  0x99   :  { %4672 = vmatpush3.bf16.msra.mxu1 %v5175_v47  ;;  %4651 = vmatprep.subr.bf16.mxu0 %v5176_v48  ;;  %v5235_v47 = vld [vmem:[%s6677_s1 + $0x6a8] sm:$0xff]   ;;  %v5236_v48 = vld [vmem:[%s6677_s1 + $0x660] sm:$0xff]  }
  0x9a   :  { %4673 = vmatprep.subr.bf16.mxu1 %v5177_v49  ;;  %v5237_v49 = vld [vmem:[%s6677_s1 + $0x6e0] sm:$0xff]  }
  0x9c   :  { %4652 = vmatpush3.bf16.msra.mxu0 %v5178_v50  ;;  %v5238_v50 = vld [vmem:[%s6677_s1 + $0x620] sm:$0xff]  }
  0x9d   :  { %4674 = vmatpush3.bf16.msra.mxu1 %v5179_v51  ;;  %4653 = vmatprep.subr.bf16.mxu0 %v5180_v52  ;;  %v5239_v51 = vld [vmem:[%s6677_s1 + $0x6a0] sm:$0xff]   ;;  %v5240_v52 = vld [vmem:[%s6677_s1 + $0x658] sm:$0xff]  }
  0x9e   :  { %4675 = vmatprep.subr.bf16.mxu1 %v5181_v53  ;;  %v5241_v53 = vld [vmem:[%s6677_s1 + $0x6d8] sm:$0xff]  }
  0xa0   :  { %4654 = vmatpush3.bf16.msra.mxu0 %v5182_v54  ;;  %v5242_v54 = vld [vmem:[%s6677_s1 + $0x618] sm:$0xff]  }
  0xa1   :  { %4676 = vmatpush3.bf16.msra.mxu1 %v5183_v55  ;;  %4683 = vmatprep.subr.bf16.mxu0 %v5188_v62  ;;  %v5243_v55 = vld [vmem:[%s6677_s1 + $0x698] sm:$0xff]   ;;  %v5250_v62 = vld [vmem:[%s6677_s1 + $0x608] sm:$0xff]  }
  0xa2   :  { %4705 = vmatprep.subr.bf16.mxu1 %v5189_v63  ;;  %v5251_v63 = vld [vmem:[%s6677_s1 + $0x688] sm:$0xff]  }
  0xa3   :  { %3352 = vmatmul.mubr.bf16.vlgmr.msra.gmra.mxu0 %v4081_v57  ;;  %v5245_v57 = vld [vmem:[%s6677_s1 + $0x6d0] sm:$0xff]  }
  0xa4   :  { %3392 = vmatmul.mubr.bf16.vlgmr.msra.gmra.mxu1 %v4083_v60  ;;  %4684 = vmatpush3.bf16.msra.mxu0 %v5190_v0  ;;  %v5248_v60 = vld [vmem:[%s6677_s1 + $0x648] sm:$0xff]   ;;  %v5252_v0 = vld [vmem:[%s6677_s1 + $0x640] sm:$0xff]  }
  0xa5   :  { %4706 = vmatpush3.bf16.msra.mxu1 %v5191_v1  ;;  %4685 = vmatprep.subr.bf16.mxu0 %v5192_v2  ;;  %v5253_v1 = vld [vmem:[%s6677_s1 + $0x6c0] sm:$0xff]  }
  0xa6   :  { %4707 = vmatprep.subr.bf16.mxu1 %v5193_v3  ;;  %3431 = vmatprep.mubr.bf16.mxu0 %v4086_v33  ;;  %v5254_v2 = vld [vmem:[%s6677_s1 + $0x600] sm:$0xff]   ;;  %v5270_v33 = vld [vmem:[%s6677_s1 + $0x728] sm:$0xff]  }
  0xa7   :  { %3471 = vmatprep.mubr.bf16.mxu1 %v4088_v35  ;;  %v5255_v3 = vld [vmem:[%s6677_s1 + $0x680] sm:$0xff]  }
  0xa8   :  { %4686 = vmatpush3.bf16.msra.mxu0 %v5194_v4  ;;  %v27_v4 = vld [vmem:[%s6678_s0 + $0x60] sm:$0xff] }
  0xa9   :  { %4708 = vmatpush3.bf16.msra.mxu1 %v5195_v5  ;;  %4687 = vmatprep.subr.bf16.mxu0 %v5196_v6  ;;  %v28_v5 = vld [vmem:[%s6678_s0 + $0x68] sm:$0xff]  ;;  %v5272_v35 = vld [vmem:[%s6677_s1 + $0x760] sm:$0xff]  }
  0xaa   :  { %4709 = vmatprep.subr.bf16.mxu1 %v5197_v7 }
  0xac   :  { %4688 = vmatpush3.bf16.msra.mxu0 %v5198_v8  ;;  %v4089_v8 = vcombine.low %v27_v4, %v27_v4 }
  0xad   :  { %4710 = vmatpush3.bf16.msra.mxu1 %v5199_v9  ;;  %4689 = vmatprep.subr.bf16.mxu0 %v5200_v10  ;;  %v4090_v9 = vcombine.high %v27_v4, %v27_v4  ;;  %v4091_v10 = vcombine.low %v28_v5, %v28_v5 }
  0xae   :  { %4711 = vmatprep.subr.bf16.mxu1 %v5201_v11  ;;  %v5260_v11 = vld [vmem:[%s6677_s1 + $0x778] sm:$0xff]  }
  0xb0   :  { %4690 = vmatpush3.bf16.msra.mxu0 %v5202_v12  ;;  %v4092_v12 = vcombine.high %v28_v5, %v28_v5 }
  0xb1   :  { %4712 = vmatpush3.bf16.msra.mxu1 %v5203_v13  ;;  %4691 = vmatprep.subr.bf16.mxu0 %v5204_v14  ;;  %v5261_v13 = vld [vmem:[%s6677_s1 + $0x7f8] sm:$0xff]  }
  0xb2   :  { %4713 = vmatprep.subr.bf16.mxu1 %v5205_v15 }
  0xb4   :  { %4692 = vmatpush3.bf16.msra.mxu0 %v5206_v16  ;;  %v5262_v16 = vld [vmem:[%s6677_s1 + $0x738] sm:$0xff]  }
  0xb5   :  { %4714 = vmatpush3.bf16.msra.mxu1 %v5207_v17  ;;  %4693 = vmatprep.subr.bf16.mxu0 %v5208_v18 }
  0xb6   :  { %4715 = vmatprep.subr.bf16.mxu1 %v5209_v19  ;;  %v5263_v19 = vld [vmem:[%s6677_s1 + $0x7b8] sm:$0xff]  }
  0xb8   :  { %4694 = vmatpush3.bf16.msra.mxu0 %v5210_v20  ;;  %v4064_v20 = vld [vmem:[%s6679_s2] ss:$0 sm:$0xff] }
  0xb9   :  { %4716 = vmatpush3.bf16.msra.mxu1 %v5211_v21  ;;  %4695 = vmatprep.subr.bf16.mxu0 %v5212_v22 }
  0xba   :  { %4717 = vmatprep.subr.bf16.mxu1 %v5213_v23 }
  0xbc   :  { %4696 = vmatpush3.bf16.msra.mxu0 %v5214_v24  ;;  %v5264_v24 = vld [vmem:[%s6677_s1 + $0x770] sm:$0xff]  }
  0xbd   :  { %4718 = vmatpush3.bf16.msra.mxu1 %v5215_v25  ;;  %4697 = vmatprep.subr.bf16.mxu0 %v5216_v26  ;;  %v5265_v25 = vld [vmem:[%s6677_s1 + $0x7f0] sm:$0xff]  }
  0xbe   :  { %4719 = vmatprep.subr.bf16.mxu1 %v5217_v27 }
  0xc0   :  { %4698 = vmatpush3.bf16.msra.mxu0 %v5218_v28 }
  0xc1   :  { %4720 = vmatpush3.bf16.msra.mxu1 %v5219_v29  ;;  %4727 = vmatprep.subr.bf16.mxu0 %v5224_v36  ;;  %v5266_v29 = vld [vmem:[%s6677_s1 + $0x730] sm:$0xff]   ;;  %v5273_v36 = vld [vmem:[%s6677_s1 + $0x7e0] sm:$0xff]  }
  0xc2   :  { %4749 = vmatprep.subr.bf16.mxu1 %v5225_v37  ;;  %v5274_v37 = vld [vmem:[%s6677_s1 + $0x720] sm:$0xff]  }
  0xc3   :  { %3432 = vmatmul.mubr.bf16.vlgmr.msra.gmra.mxu0 %v4085_v32  ;;  %v5269_v32 = vld [vmem:[%s6677_s1 + $0x7e8] sm:$0xff]  }
  0xc4   :  { %3472 = vmatmul.mubr.bf16.vlgmr.msra.gmra.mxu1 %v4087_v34  ;;  %4728 = vmatpush3.bf16.msra.mxu0 %v5226_v38  ;;  %v5271_v34 = vld [vmem:[%s6677_s1 + $0x7a8] sm:$0xff]   ;;  %v5275_v38 = vld [vmem:[%s6677_s1 + $0x7a0] sm:$0xff]  }
  0xc5   :  { %4750 = vmatpush3.bf16.msra.mxu1 %v5227_v39  ;;  %4729 = vmatprep.subr.bf16.mxu0 %v5228_v40  ;;  %v5276_v39 = vld [vmem:[%s6677_s1 + $0x758] sm:$0xff]  }
  0xc6   :  { %4751 = vmatprep.subr.bf16.mxu1 %v5229_v41  ;;  %3511 = vmatprep.mubr.bf16.mxu0 %v4090_v9  ;;  %v5277_v40 = vld [vmem:[%s6677_s1 + $0x7d8] sm:$0xff]  }
  0xc7   :  { %3551 = vmatprep.mubr.bf16.mxu1 %v4092_v12  ;;  %v5278_v41 = vld [vmem:[%s6677_s1 + $0x718] sm:$0xff]  }
  0xc8   :  { %4730 = vmatpush3.bf16.msra.mxu0 %v5230_v42  ;;  %v5279_v42 = vld [vmem:[%s6677_s1 + $0x798] sm:$0xff]  }
  0xc9   :  { %4752 = vmatpush3.bf16.msra.mxu1 %v5231_v43  ;;  %4731 = vmatprep.subr.bf16.mxu0 %v5232_v44  ;;  %v5280_v43 = vld [vmem:[%s6677_s1 + $0x750] sm:$0xff]  }
  0xca   :  { %4753 = vmatprep.subr.bf16.mxu1 %v5233_v45  ;;  %v5281_v44 = vld [vmem:[%s6677_s1 + $0x7d0] sm:$0xff]  }
  0xcb   :  { %v5282_v45 = vld [vmem:[%s6677_s1 + $0x710] sm:$0xff]  }
  0xcc   :  { %4732 = vmatpush3.bf16.msra.mxu0 %v5234_v46  ;;  %v5283_v46 = vld [vmem:[%s6677_s1 + $0x790] sm:$0xff]  }
  0xcd   :  { %4754 = vmatpush3.bf16.msra.mxu1 %v5235_v47  ;;  %4733 = vmatprep.subr.bf16.mxu0 %v5236_v48  ;;  %v5284_v47 = vld [vmem:[%s6677_s1 + $0x748] sm:$0xff]  }
  0xce   :  { %4755 = vmatprep.subr.bf16.mxu1 %v5237_v49  ;;  %v5285_v48 = vld [vmem:[%s6677_s1 + $0x7c8] sm:$0xff]  }
  0xcf   :  { %v5286_v49 = vld [vmem:[%s6677_s1 + $0x708] sm:$0xff]  }
  0xd0   :  { %4734 = vmatpush3.bf16.msra.mxu0 %v5238_v50  ;;  %v5287_v50 = vld [vmem:[%s6677_s1 + $0x788] sm:$0xff]  }
  0xd1   :  { %4756 = vmatpush3.bf16.msra.mxu1 %v5239_v51  ;;  %4735 = vmatprep.subr.bf16.mxu0 %v5240_v52  ;;  %v5288_v51 = vld [vmem:[%s6677_s1 + $0x740] sm:$0xff]  }
  0xd2   :  { %4757 = vmatprep.subr.bf16.mxu1 %v5241_v53  ;;  %v5289_v52 = vld [vmem:[%s6677_s1 + $0x7c0] sm:$0xff]  }
  0xd3   :  { %v5290_v53 = vld [vmem:[%s6677_s1 + $0x700] sm:$0xff]  }
  0xd4   :  { %4736 = vmatpush3.bf16.msra.mxu0 %v5242_v54  ;;  %v5291_v54 = vld [vmem:[%s6677_s1 + $0x780] sm:$0xff]  }
  0xd5   :  { %4758 = vmatpush3.bf16.msra.mxu1 %v5243_v55  ;;  %4737 = vmatprep.subr.bf16.mxu0 %v5244_v56  ;;  %v29_v55 = vld [vmem:[%s6678_s0 + $0x70] sm:$0xff]  ;;  %v30_v56 = vld [vmem:[%s6678_s0 + $0x78] sm:$0xff] }
  0xd6   :  { %4759 = vmatprep.subr.bf16.mxu1 %v5245_v57 }
  0xd8   :  { %4738 = vmatpush3.bf16.msra.mxu0 %v5246_v58 }
  0xd9   :  { %4760 = vmatpush3.bf16.msra.mxu1 %v5247_v59  ;;  %4739 = vmatprep.subr.bf16.mxu0 %v5248_v60  ;;  %v4093_v59 = vcombine.low %v29_v55, %v29_v55  ;;  %v4094_v60 = vcombine.high %v29_v55, %v29_v55 }
  0xda   :  { %4761 = vmatprep.subr.bf16.mxu1 %v5249_v61  ;;  %v4095_v61 = vcombine.low %v30_v56, %v30_v56 }
  0xdc   :  { %4740 = vmatpush3.bf16.msra.mxu0 %v5250_v62  ;;  %v5296_v62 = vld [vmem:[%s6677_s1 + $0x878] sm:$0xff]  }
  0xdd   :  { %4762 = vmatpush3.bf16.msra.mxu1 %v5251_v63  ;;  %4741 = vmatprep.subr.bf16.mxu0 %v5252_v0  ;;  %v4096_v63 = vcombine.high %v30_v56, %v30_v56  ;;  %v5297_v0 = vld [vmem:[%s6677_s1 + $0x8f8] sm:$0xff]  }
  0xde   :  { %4763 = vmatprep.subr.bf16.mxu1 %v5253_v1 }
  0xe0   :  { %4742 = vmatpush3.bf16.msra.mxu0 %v5254_v2 }
  0xe1   :  { %4764 = vmatpush3.bf16.msra.mxu1 %v5255_v3  ;;  %4771 = vmatprep.subr.bf16.mxu0 %v5260_v11  ;;  %v5298_v3 = vld [vmem:[%s6677_s1 + $0x838] sm:$0xff]   ;;  %v5301_v11 = vld [vmem:[%s6677_s1 + $0x8f0] sm:$0xff]  }
  0xe2   :  { %4793 = vmatprep.subr.bf16.mxu1 %v5261_v13 }
  0xe3   :  { %v4479_v6 = vpop.f32.mrf.mxu0  ;;  %3512 = vmatmul.mubr.bf16.vlgmr.msra.gmra.mxu0 %v4089_v8 }
  0xe4   :  { %v4501_v7 = vpop.f32.mrf.mxu1  ;;  %3552 = vmatmul.mubr.bf16.vlgmr.msra.gmra.mxu1 %v4091_v10  ;;  %4772 = vmatpush3.bf16.msra.mxu0 %v5262_v16  ;;  %v5300_v10 = vld [vmem:[%s6677_s1 + $0x870] sm:$0xff]  }
  0xe5   :  { %v4480_v14 = vpop.f32.mrf.mxu0  ;;  %4794 = vmatpush3.bf16.msra.mxu1 %v5263_v19  ;;  %4773 = vmatprep.subr.bf16.mxu0 %v5264_v24  ;;  %v5303_v16 = vld [vmem:[%s6677_s1 + $0x8b0] sm:$0xff]   ;;  %v5306_v19 = vld [vmem:[%s6677_s1 + $0x828] sm:$0xff]   ;;  %v5311_v24 = vld [vmem:[%s6677_s1 + $0x8a0] sm:$0xff]  }
  0xe6   :  { %v4502_v15 = vpop.f32.mrf.mxu1  ;;  %v4481_v17 = vadd.f32 %v4480_v14, %v4479_v6  ;;  %4795 = vmatprep.subr.bf16.mxu1 %v5265_v25  ;;  %3591 = vmatprep.mubr.bf16.mxu0 %v4094_v60  ;;  %v5299_v6 = vld [vmem:[%s6677_s1 + $0x8b8] sm:$0xff]   ;;  %v5336_v60 = vld [vmem:[%s6677_s1 + $0x970] sm:$0xff]  }
  0xe7   :  { %v4503_v18 = vadd.f32 %v4502_v15, %v4501_v7  ;;  %v4482_v22 = vpop.f32.mrf.mxu0  ;;  %3631 = vmatprep.mubr.bf16.mxu1 %v4096_v63  ;;  %v5302_v15 = vld [vmem:[%s6677_s1 + $0x830] sm:$0xff]   ;;  %v5312_v25 = vld [vmem:[%s6677_s1 + $0x858] sm:$0xff]  }
  0xe8   :  { %v4504_v21 = vpop.f32.mrf.mxu1  ;;  %v3034_v23 = vadd.f32 %v4481_v17, %v4064_v20  ;;  %4774 = vmatpush3.bf16.msra.mxu0 %v5266_v29  ;;  %v5304_v17 = vld [vmem:[%s6677_s1 + $0x868] sm:$0xff]   ;;  %v5309_v22 = vld [vmem:[%s6677_s1 + $0x8e0] sm:$0xff]   ;;  %v5316_v29 = vld [vmem:[%s6677_s1 + $0x850] sm:$0xff]  }
  0xe9   :  { %v4483_v27 = vpop.f32.mrf.mxu0  ;;  %4796 = vmatpush3.bf16.msra.mxu1 %v5267_v30  ;;  %4775 = vmatprep.subr.bf16.mxu0 %v5268_v31  ;;  %v5307_v20 = vld [vmem:[%s6677_s1 + $0x8a8] sm:$0xff]   ;;  %v5308_v21 = vld [vmem:[%s6677_s1 + $0x860] sm:$0xff]   ;;  %v5317_v30 = vld [vmem:[%s6677_s1 + $0x8d0] sm:$0xff]  }
  0xea   :  { %v4505_v26 = vpop.f32.mrf.mxu1  ;;  %v6160_v28 = vadd.f32 %v4503_v18, %v3034_v23  ;;  %4797 = vmatprep.subr.bf16.mxu1 %v5269_v32  ;;  %v5305_v18 = vld [vmem:[%s6677_s1 + $0x8e8] sm:$0xff]   ;;  %v5310_v23 = vld [vmem:[%s6677_s1 + $0x820] sm:$0xff]   ;;  %v5314_v27 = vld [vmem:[%s6677_s1 + $0x818] sm:$0xff]  }
  0xeb   :  { %v5313_v26 = vld [vmem:[%s6677_s1 + $0x8d8] sm:$0xff]   ;;  %v5318_v31 = vld [vmem:[%s6677_s1 + $0x810] sm:$0xff]  }
  0xec   :  { %4776 = vmatpush3.bf16.msra.mxu0 %v5270_v33  ;;  %v5319_v32 = vld [vmem:[%s6677_s1 + $0x890] sm:$0xff]   ;;  %v5320_v33 = vld [vmem:[%s6677_s1 + $0x848] sm:$0xff]  }
  0xed   :  { %4798 = vmatpush3.bf16.msra.mxu1 %v5271_v34  ;;  %4777 = vmatprep.subr.bf16.mxu0 %v5272_v35  ;;  %v5321_v34 = vld [vmem:[%s6677_s1 + $0x8c8] sm:$0xff]   ;;  %v5337_v63 = vld [vmem:[%s6677_s1 + $0x9f0] sm:$0xff]  }
  0xee   :  { %4799 = vmatprep.subr.bf16.mxu1 %v5273_v36  ;;  %v5322_v35 = vld [vmem:[%s6677_s1 + $0x808] sm:$0xff]  }
  0xef   :  { %v5323_v36 = vld [vmem:[%s6677_s1 + $0x888] sm:$0xff]  }
  0xf0   :  { %4778 = vmatpush3.bf16.msra.mxu0 %v5274_v37  ;;  %v5324_v37 = vld [vmem:[%s6677_s1 + $0x840] sm:$0xff]  }
  0xf1   :  { %4800 = vmatpush3.bf16.msra.mxu1 %v5275_v38  ;;  %4779 = vmatprep.subr.bf16.mxu0 %v5276_v39  ;;  %v5325_v38 = vld [vmem:[%s6677_s1 + $0x8c0] sm:$0xff]  }
  0xf2   :  { %4801 = vmatprep.subr.bf16.mxu1 %v5277_v40  ;;  %v5326_v39 = vld [vmem:[%s6677_s1 + $0x800] sm:$0xff]  }
  0xf3   :  { %v5327_v40 = vld [vmem:[%s6677_s1 + $0x880] sm:$0xff]  }
  0xf4   :  { %4780 = vmatpush3.bf16.msra.mxu0 %v5278_v41  ;;  %v31_v41 = vld [vmem:[%s6678_s0 + $0x80] sm:$0xff] }
  0xf5   :  { %4802 = vmatpush3.bf16.msra.mxu1 %v5279_v42  ;;  %4781 = vmatprep.subr.bf16.mxu0 %v5280_v43  ;;  %v4097_v43 = vcombine.low %v31_v41, %v31_v41 }
  0xf6   :  { %4803 = vmatprep.subr.bf16.mxu1 %v5281_v44  ;;  %v4098_v44 = vcombine.high %v31_v41, %v31_v41 }
  0xf8   :  { %4782 = vmatpush3.bf16.msra.mxu0 %v5282_v45  ;;  %v32_v45 = vld [vmem:[%s6678_s0 + $0x88] sm:$0xff] }
  0xf9   :  { %4804 = vmatpush3.bf16.msra.mxu1 %v5283_v46  ;;  %4783 = vmatprep.subr.bf16.mxu0 %v5284_v47  ;;  %v4099_v47 = vcombine.low %v32_v45, %v32_v45 }
  0xfa   :  { %4805 = vmatprep.subr.bf16.mxu1 %v5285_v48  ;;  %v4100_v48 = vcombine.high %v32_v45, %v32_v45 }
  0xfc   :  { %4784 = vmatpush3.bf16.msra.mxu0 %v5286_v49  ;;  %v5332_v49 = vld [vmem:[%s6677_s1 + $0x978] sm:$0xff]  }
  0xfd   :  { %4806 = vmatpush3.bf16.msra.mxu1 %v5287_v50  ;;  %4785 = vmatprep.subr.bf16.mxu0 %v5288_v51  ;;  %v5333_v51 = vld [vmem:[%s6677_s1 + $0x9f8] sm:$0xff]  }
  0xfe   :  { %4807 = vmatprep.subr.bf16.mxu1 %v5289_v52 }
 0x100   :  { %4786 = vmatpush3.bf16.msra.mxu0 %v5290_v53 }
 0x101   :  { %4808 = vmatpush3.bf16.msra.mxu1 %v5291_v54  ;;  %4815 = vmatprep.subr.bf16.mxu0 %v5296_v62  ;;  %v5334_v54 = vld [vmem:[%s6677_s1 + $0x938] sm:$0xff]  }
 0x102   :  { %4837 = vmatprep.subr.bf16.mxu1 %v5297_v0 }
 0x103   :  { %v4523_v57 = vpop.f32.mrf.mxu0  ;;  %3592 = vmatmul.mubr.bf16.vlgmr.msra.gmra.mxu0 %v4093_v59 }
 0x104   :  { %v4545_v58 = vpop.f32.mrf.mxu1  ;;  %3632 = vmatmul.mubr.bf16.vlgmr.msra.gmra.mxu1 %v4095_v61  ;;  %4816 = vmatpush3.bf16.msra.mxu0 %v5298_v3  ;;  %v5340_v3 = vld [vmem:[%s6677_s1 + $0x968] sm:$0xff]  }
 0x105   :  { %v4524_v1 = vpop.f32.mrf.mxu0  ;;  %4838 = vmatpush3.bf16.msra.mxu1 %v5299_v6  ;;  %4817 = vmatprep.subr.bf16.mxu0 %v5300_v10  ;;  %v5343_v6 = vld [vmem:[%s6677_s1 + $0x9a8] sm:$0xff]   ;;  %v5347_v10 = vld [vmem:[%s6677_s1 + $0x9a0] sm:$0xff]  }
 0x106   :  { %v4546_v2 = vpop.f32.mrf.mxu1  ;;  %v4525_v4 = vadd.f32 %v4524_v1, %v4523_v57  ;;  %4839 = vmatprep.subr.bf16.mxu1 %v5301_v11  ;;  %3671 = vmatprep.mubr.bf16.mxu0 %v4098_v44  ;;  %v5335_v57 = vld [vmem:[%s6677_s1 + $0x9b8] sm:$0xff]   ;;  %v5338_v1 = vld [vmem:[%s6677_s1 + $0x930] sm:$0xff]   ;;  %v5402_v44 = vmov 0  }
 0x107   :  { %v4547_v5 = vadd.f32 %v4546_v2, %v4545_v58  ;;  %v4526_v8 = vpop.f32.mrf.mxu0  ;;  %3711 = vmatprep.mubr.bf16.mxu1 %v4100_v48  ;;  %v5339_v2 = vld [vmem:[%s6677_s1 + $0x9b0] sm:$0xff]   ;;  %v5348_v11 = vld [vmem:[%s6677_s1 + $0x958] sm:$0xff]  }
 0x108   :  { %v4548_v7 = vpop.f32.mrf.mxu1  ;;  %v3114_v9 = vadd.f32 %v4525_v4, %v6160_v28  ;;  %4818 = vmatpush3.bf16.msra.mxu0 %v5302_v15  ;;  %v5315_v28 = vld [vmem:[%s6677_s1 + $0x898] sm:$0xff]   ;;  %v5341_v4 = vld [vmem:[%s6677_s1 + $0x9e8] sm:$0xff]   ;;  %v5345_v8 = vld [vmem:[%s6677_s1 + $0x9e0] sm:$0xff]  }
 0x109   :  { %v4527_v13 = vpop.f32.mrf.mxu0  ;;  %4840 = vmatpush3.bf16.msra.mxu1 %v5303_v16  ;;  %4819 = vmatprep.subr.bf16.mxu0 %v5304_v17  ;;  %v5344_v7 = vld [vmem:[%s6677_s1 + $0x960] sm:$0xff]   ;;  %v5352_v15 = vld [vmem:[%s6677_s1 + $0x950] sm:$0xff]  }
 0x10a   :  { %v4549_v12 = vpop.f32.mrf.mxu1  ;;  %v6265_v14 = vadd.f32 %v4547_v5, %v3114_v9  ;;  %4841 = vmatprep.subr.bf16.mxu1 %v5305_v18  ;;  %v5342_v5 = vld [vmem:[%s6677_s1 + $0x928] sm:$0xff]   ;;  %v5346_v9 = vld [vmem:[%s6677_s1 + $0x920] sm:$0xff]   ;;  %v5350_v13 = vld [vmem:[%s6677_s1 + $0x918] sm:$0xff]  }
 0x10b   :  { %v5349_v12 = vld [vmem:[%s6677_s1 + $0x9d8] sm:$0xff]   ;;  %v5353_v16 = vld [vmem:[%s6677_s1 + $0x9d0] sm:$0xff]  }
 0x10c   :  { %4820 = vmatpush3.bf16.msra.mxu0 %v5306_v19  ;;  %v5354_v17 = vld [vmem:[%s6677_s1 + $0x910] sm:$0xff]   ;;  %v5356_v19 = vld [vmem:[%s6677_s1 + $0x948] sm:$0xff]  }
 0x10d   :  { %4842 = vmatpush3.bf16.msra.mxu1 %v5307_v20  ;;  %4821 = vmatprep.subr.bf16.mxu0 %v5308_v21  ;;  %v5355_v18 = vld [vmem:[%s6677_s1 + $0x990] sm:$0xff]   ;;  %v5357_v20 = vld [vmem:[%s6677_s1 + $0x9c8] sm:$0xff]  }
 0x10e   :  { %4843 = vmatprep.subr.bf16.mxu1 %v5309_v22  ;;  %v5358_v21 = vld [vmem:[%s6677_s1 + $0x908] sm:$0xff]   ;;  %v5373_v48 = vld [vmem:[%s6677_s1 + $0xab0] sm:$0xff]  }
 0x10f   :  { %v5359_v22 = vld [vmem:[%s6677_s1 + $0x988] sm:$0xff]  }
 0x110   :  { %4822 = vmatpush3.bf16.msra.mxu0 %v5310_v23  ;;  %v5360_v23 = vld [vmem:[%s6677_s1 + $0x940] sm:$0xff]  }
 0x111   :  { %4844 = vmatpush3.bf16.msra.mxu1 %v5311_v24  ;;  %4823 = vmatprep.subr.bf16.mxu0 %v5312_v25  ;;  %v5361_v24 = vld [vmem:[%s6677_s1 + $0x9c0] sm:$0xff]  }
 0x112   :  { %4845 = vmatprep.subr.bf16.mxu1 %v5313_v26  ;;  %v5362_v25 = vld [vmem:[%s6677_s1 + $0x900] sm:$0xff]  }
 0x113   :  { %v5363_v26 = vld [vmem:[%s6677_s1 + $0x980] sm:$0xff]  }
 0x114   :  { %4824 = vmatpush3.bf16.msra.mxu0 %v5314_v27  ;;  %v33_v27 = vld [vmem:[%s6678_s0 + $0x90] sm:$0xff] }
 0x115   :  { %4846 = vmatpush3.bf16.msra.mxu1 %v5315_v28  ;;  %4825 = vmatprep.subr.bf16.mxu0 %v5316_v29  ;;  %v34_v28 = vld [vmem:[%s6678_s0 + $0x98] sm:$0xff] }
 0x116   :  { %4847 = vmatprep.subr.bf16.mxu1 %v5317_v30  ;;  %v4101_v30 = vcombine.low %v33_v27, %v33_v27 }
 0x118   :  { %4826 = vmatpush3.bf16.msra.mxu0 %v5318_v31  ;;  %v4102_v31 = vcombine.high %v33_v27, %v33_v27  ;;  %v5398_v27 = vld [vmem:[%s6677_s1 + $0xac8] sm:$0xff]  }
 0x119   :  { %4848 = vmatpush3.bf16.msra.mxu1 %v5319_v32  ;;  %4827 = vmatprep.subr.bf16.mxu0 %v5320_v33  ;;  %v4103_v32 = vcombine.low %v34_v28, %v34_v28  ;;  %v4104_v33 = vcombine.high %v34_v28, %v34_v28  ;;  %v5399_v28 = vld [vmem:[%s6677_s1 + $0xac0] sm:$0xff]  }
 0x11a   :  { %4849 = vmatprep.subr.bf16.mxu1 %v5321_v34 }
 0x11c   :  { %4828 = vmatpush3.bf16.msra.mxu0 %v5322_v35  ;;  %v5368_v35 = vld [vmem:[%s6677_s1 + $0xa78] sm:$0xff]  }
 0x11d   :  { %4850 = vmatpush3.bf16.msra.mxu1 %v5323_v36  ;;  %4829 = vmatprep.subr.bf16.mxu0 %v5324_v37  ;;  %v5369_v36 = vld [vmem:[%s6677_s1 + $0xa38] sm:$0xff]  }
 0x11e   :  { %4851 = vmatprep.subr.bf16.mxu1 %v5325_v38  ;;  %v5370_v38 = vld [vmem:[%s6677_s1 + $0xab8] sm:$0xff]  }
 0x120   :  { %4830 = vmatpush3.bf16.msra.mxu0 %v5326_v39 }
 0x121   :  { %4852 = vmatpush3.bf16.msra.mxu1 %v5327_v40  ;;  %4859 = vmatprep.subr.bf16.mxu0 %v5332_v49 }
 0x122   :  { %4881 = vmatprep.subr.bf16.mxu1 %v5333_v51 }
 0x123   :  { %v4567_v42 = vpop.f32.mrf.mxu0  ;;  %3672 = vmatmul.mubr.bf16.vlgmr.msra.gmra.mxu0 %v4097_v43 }
 0x124   :  { %v4589_v46 = vpop.f32.mrf.mxu1  ;;  %3712 = vmatmul.mubr.bf16.vlgmr.msra.gmra.mxu1 %v4099_v47  ;;  %4860 = vmatpush3.bf16.msra.mxu0 %v5334_v54  ;;  %v5372_v47 = vld [vmem:[%s6677_s1 + $0xa30] sm:$0xff]   ;;  %v5376_v54 = vld [vmem:[%s6677_s1 + $0xaa8] sm:$0xff]  }
 0x125   :  { %v4568_v50 = vpop.f32.mrf.mxu0  ;;  %4882 = vmatpush3.bf16.msra.mxu1 %v5335_v57  ;;  %4861 = vmatprep.subr.bf16.mxu0 %v5336_v60  ;;  %v5379_v57 = vld [vmem:[%s6677_s1 + $0xaa0] sm:$0xff]   ;;  %v5382_v60 = vld [vmem:[%s6677_s1 + $0xa98] sm:$0xff]  }
 0x126   :  { %v4569_v52 = vadd.f32 %v4568_v50, %v4567_v42  ;;  %v4590_v53 = vpop.f32.mrf.mxu1  ;;  %4883 = vmatprep.subr.bf16.mxu1 %v5337_v63  ;;  %3751 = vmatprep.mubr.bf16.mxu0 %v4102_v31  ;;  %v5371_v42 = vld [vmem:[%s6677_s1 + $0xa70] sm:$0xff]  }
 0x127   :  { %v4591_v55 = vadd.f32 %v4590_v53, %v4589_v46  ;;  %v4570_v56 = vpop.f32.mrf.mxu0  ;;  %3791 = vmatprep.mubr.bf16.mxu1 %v4104_v33  ;;  %v5375_v53 = vld [vmem:[%s6677_s1 + $0xa28] sm:$0xff]   ;;  %v5385_v63 = vld [vmem:[%s6677_s1 + $0xa90] sm:$0xff]  }
 0x128   :  { %v3194_v58 = vadd.f32 %v4569_v52, %v6265_v14  ;;  %v4592_v59 = vpop.f32.mrf.mxu1  ;;  %4862 = vmatpush3.bf16.msra.mxu0 %v5338_v1  ;;  %v5351_v14 = vld [vmem:[%s6677_s1 + $0x998] sm:$0xff]   ;;  %v5374_v52 = vld [vmem:[%s6677_s1 + $0xa68] sm:$0xff]   ;;  %v5378_v56 = vld [vmem:[%s6677_s1 + $0xa20] sm:$0xff]  }
 0x129   :  { %v4571_v61 = vpop.f32.mrf.mxu0  ;;  %4884 = vmatpush3.bf16.msra.mxu1 %v5339_v2  ;;  %4863 = vmatprep.subr.bf16.mxu0 %v5340_v3  ;;  %v5381_v59 = vld [vmem:[%s6677_s1 + $0xa18] sm:$0xff]   ;;  %v5387_v1 = vld [vmem:[%s6677_s1 + $0xa08] sm:$0xff]   ;;  %v35_v2 = vld [vmem:[%s6678_s0 + $0xa0] sm:$0xff] }
 0x12a   :  { %v6367_v62 = vadd.f32 %v4591_v55, %v3194_v58  ;;  %v4593_v0 = vpop.f32.mrf.mxu1  ;;  %4885 = vmatprep.subr.bf16.mxu1 %v5341_v4  ;;  %v5377_v55 = vld [vmem:[%s6677_s1 + $0xa60] sm:$0xff]   ;;  %v5380_v58 = vld [vmem:[%s6677_s1 + $0xa58] sm:$0xff]   ;;  %v5383_v61 = vld [vmem:[%s6677_s1 + $0xa50] sm:$0xff]   ;;  %v4106_v4 = vcombine.high %v35_v2, %v35_v2 }
 0x12b   :  { %v5386_v0 = vld [vmem:[%s6677_s1 + $0xa48] sm:$0xff]  }
 0x12c   :  { %4864 = vmatpush3.bf16.msra.mxu0 %v5342_v5  ;;  %v5388_v3 = vld [vmem:[%s6677_s1 + $0xa88] sm:$0xff]   ;;  %v5389_v5 = vld [vmem:[%s6677_s1 + $0xa40] sm:$0xff]  }
 0x12d   :  { %4886 = vmatpush3.bf16.msra.mxu1 %v5343_v6  ;;  %4865 = vmatprep.subr.bf16.mxu0 %v5344_v7  ;;  %v5390_v6 = vld [vmem:[%s6677_s1 + $0xa00] sm:$0xff]  }
 0x12e   :  { %4887 = vmatprep.subr.bf16.mxu1 %v5345_v8  ;;  %v5391_v7 = vld [vmem:[%s6677_s1 + $0xa80] sm:$0xff]   ;;  %v36_v8 = vld [vmem:[%s6678_s0 + $0xa8] sm:$0xff] }
 0x130   :  { %4866 = vmatpush3.bf16.msra.mxu0 %v5346_v9  ;;  %v4108_v9 = vcombine.high %v36_v8, %v36_v8 }
 0x131   :  { %4888 = vmatpush3.bf16.msra.mxu1 %v5347_v10  ;;  %4867 = vmatprep.subr.bf16.mxu0 %v5348_v11  ;;  %v4105_v10 = vcombine.low %v35_v2, %v35_v2 }
 0x132   :  { %4889 = vmatprep.subr.bf16.mxu1 %v5349_v12 }
 0x134   :  { %4868 = vmatpush3.bf16.msra.mxu0 %v5350_v13  ;;  %v5394_v13 = vld [vmem:[%s6677_s1 + $0xae8] sm:$0xff]  }
 0x135   :  { %4890 = vmatpush3.bf16.msra.mxu1 %v5351_v14  ;;  %4869 = vmatprep.subr.bf16.mxu0 %v5352_v15 }
 0x136   :  { %4891 = vmatprep.subr.bf16.mxu1 %v5353_v16 }
 0x138   :  { %4870 = vmatpush3.bf16.msra.mxu0 %v5354_v17 }
 0x139   :  { %4892 = vmatpush3.bf16.msra.mxu1 %v5355_v18  ;;  %4871 = vmatprep.subr.bf16.mxu0 %v5356_v19 }
 0x13a   :  { %4893 = vmatprep.subr.bf16.mxu1 %v5357_v20 }
 0x13c   :  { %4872 = vmatpush3.bf16.msra.mxu0 %v5358_v21  ;;  %v5395_v21 = vld [vmem:[%s6677_s1 + $0xae0] sm:$0xff]  }
 0x13d   :  { %4894 = vmatpush3.bf16.msra.mxu1 %v5359_v22  ;;  %4873 = vmatprep.subr.bf16.mxu0 %v5360_v23 }
 0x13e   :  { %4895 = vmatprep.subr.bf16.mxu1 %v5361_v24 }
 0x140   :  { %4874 = vmatpush3.bf16.msra.mxu0 %v5362_v25  ;;  %v5396_v25 = vld [vmem:[%s6677_s1 + $0xad8] sm:$0xff]  }
 0x141   :  { %4896 = vmatpush3.bf16.msra.mxu1 %v5363_v26  ;;  %4903 = vmatprep.subr.bf16.mxu0 %v5368_v35  ;;  %v5397_v26 = vld [vmem:[%s6677_s1 + $0xad0] sm:$0xff]  }
 0x142   :  { %3839 = vmatprep.subr.bf16.mxu1 %v5402_v44 }
 0x143   :  { %v4611_v29 = vpop.f32.mrf.mxu0  ;;  %3752 = vmatmul.mubr.bf16.vlgmr.msra.gmra.mxu0 %v4101_v30 }
 0x144   :  { %v4633_v34 = vpop.f32.mrf.mxu1  ;;  %3792 = vmatmul.mubr.bf16.vlgmr.msra.gmra.mxu1 %v4103_v32  ;;  %4904 = vmatpush3.bf16.msra.mxu0 %v5369_v36 }
 0x145   :  { %v4612_v37 = vpop.f32.mrf.mxu0  ;;  %3840 = vmatpush1.bf16.msra.mxu1 %v5370_v38  ;;  %4905 = vmatprep.subr.bf16.mxu0 %v5371_v42 }
 0x146   :  { %v4613_v39 = vadd.f32 %v4612_v37, %v4611_v29  ;;  %v4634_v40 = vpop.f32.mrf.mxu1  ;;  %3841 = vmatprep.subr.bf16.mxu1 %v5402_v44  ;;  %3831 = vmatprep.mubr.bf16.mxu0 %v4106_v4  ;;  %v4107_v29 = vcombine.low %v36_v8, %v36_v8  ;;  %v3981_v4 = vld [vmem:[%s6679_s2 + $0xb0] sm:$0xff] }
 0x147   :  { %v4635_v41 = vadd.f32 %v4634_v40, %v4633_v34  ;;  %v4614_v43 = vpop.f32.mrf.mxu0  ;;  %4459 = vmatprep.mubr.msk.bf16.mxu1 %vm2995_vm0, %v4108_v9  ;;  %v3980_v9 = vld [vmem:[%s6679_s2 + $0xa8] sm:$0xff] }
 0x148   :  { %v3274_v45 = vadd.f32 %v4613_v39, %v6367_v62  ;;  %v4636_v46 = vpop.f32.mrf.mxu1  ;;  %4906 = vmatpush3.bf16.msra.mxu0 %v5372_v47  ;;  %v5384_v62 = vld [vmem:[%s6677_s1 + $0xa10] sm:$0xff]  }
 0x149   :  { %v4615_v49 = vpop.f32.mrf.mxu0  ;;  %3842 = vmatpush1.bf16.msra.mxu1 %v5373_v48  ;;  %4907 = vmatprep.subr.bf16.mxu0 %v5374_v52  ;;  %v3887_v52 = vld [vmem:[%s6679_s2 + $0x40] sm:$0xff] }
 0x14a   :  { %v6476_v50 = vadd.f32 %v4635_v41, %v3274_v45  ;;  %v4637_v51 = vpop.f32.mrf.mxu1  ;;  %3843 = vmatprep.subr.bf16.mxu1 %v5402_v44 }
 0x14c   :  { %4908 = vmatpush3.bf16.msra.mxu0 %v5375_v53 }
 0x14d   :  { %3844 = vmatpush1.bf16.msra.mxu1 %v5376_v54  ;;  %4909 = vmatprep.subr.bf16.mxu0 %v5377_v55  ;;  %v5403_v55 = vmov 0.0  }
 0x14e   :  { %3845 = vmatprep.subr.bf16.mxu1 %v5402_v44 }
 0x150   :  { %4910 = vmatpush3.bf16.msra.mxu0 %v5378_v56  ;;  %v3886_v56 = vld [vmem:[%s6679_s2 + $0x38] sm:$0xff] }
 0x151   :  { %3846 = vmatpush1.bf16.msra.mxu1 %v5379_v57  ;;  %4911 = vmatprep.subr.bf16.mxu0 %v5380_v58  ;;  %v3885_v57 = vld [vmem:[%s6679_s2 + $0x30] sm:$0xff]  ;;  %v3884_v58 = vld [vmem:[%s6679_s2 + $0x28] sm:$0xff] }
 0x152   :  { %3847 = vmatprep.subr.bf16.mxu1 %v5402_v44 }
 0x154   :  { %4912 = vmatpush3.bf16.msra.mxu0 %v5381_v59  ;;  %v3883_v59 = vld [vmem:[%s6679_s2 + $0x20] sm:$0xff] }
 0x155   :  { %3848 = vmatpush1.bf16.msra.mxu1 %v5382_v60  ;;  %4913 = vmatprep.subr.bf16.mxu0 %v5383_v61  ;;  %v3882_v60 = vld [vmem:[%s6679_s2 + $0x18] sm:$0xff]  ;;  %v3881_v61 = vld [vmem:[%s6679_s2 + $0x10] sm:$0xff] }
 0x156   :  { %3849 = vmatprep.subr.bf16.mxu1 %v5402_v44 }
 0x158   :  { %4914 = vmatpush3.bf16.msra.mxu0 %v5384_v62  ;;  %v3880_v62 = vld [vmem:[%s6679_s2 + $0x8] sm:$0xff] }
 0x159   :  { %3850 = vmatpush1.bf16.msra.mxu1 %v5385_v63  ;;  %4915 = vmatprep.subr.bf16.mxu0 %v5386_v0  ;;  %v3983_v0 = vld [vmem:[%s6679_s2 + $0xc0] sm:$0xff] }
 0x15a   :  { %3851 = vmatprep.subr.bf16.mxu1 %v5402_v44 }
 0x15c   :  { %4916 = vmatpush3.bf16.msra.mxu0 %v5387_v1  ;;  %v3982_v1 = vld [vmem:[%s6679_s2 + $0xb8] sm:$0xff] }
 0x15d   :  { %3852 = vmatpush1.bf16.msra.mxu1 %v5388_v3  ;;  %4917 = vmatprep.subr.bf16.mxu0 %v5389_v5 }
 0x15e   :  { %3853 = vmatprep.subr.bf16.mxu1 %v5402_v44 }
 0x160   :  { %4918 = vmatpush3.bf16.msra.mxu0 %v5390_v6 }
 0x161   :  { %3854 = vmatpush1.bf16.msra.mxu1 %v5391_v7  ;;  %4970 = vmatprep.subr.mxu0 %v5403_v55 }
 0x162   :  { %3859 = vmatprep.subr.bf16.mxu1 %v5402_v44 }
 0x163   :  { %v4655_v11 = vpop.f32.mrf.mxu0  ;;  %3832 = vmatmul.mubr.bf16.vlgmr.msra.gmra.mxu0 %v4105_v10 }
 0x164   :  { %v4677_v12 = vpop.f32.mrf.mxu1  ;;  %5002 = vmatprep.mubr.msk.f32.mxu0 %vm5404_vm1, %v5403_v55  ;;  %4971 = vmatpush3.msra.mxu0 %v3983_v0  ;;  %v4460_v0 = vld [vmem:[%s6679_s2 + $0x1] ss:$0 sm:$0xff] }
 0x165   :  { %v4656_v14 = vpop.f32.mrf.mxu0  ;;  %3860 = vmatpush2.bf16.msra.mxu1 %v5394_v13  ;;  %4972 = vmatprep.subr.mxu0 %v5403_v55  ;;  %v3979_v13 = vld [vmem:[%s6679_s2 + $0xa0] sm:$0xff] }
 0x166   :  { %v4678_v15 = vpop.f32.mrf.mxu1  ;;  %v4657_v16 = vadd.f32 %v4656_v14, %v4655_v11  ;;  %3861 = vmatprep.subr.bf16.mxu1 %v5402_v44  ;;  %4973 = vmatpush3.msra.mxu0 %v3982_v1 }
 0x167   :  { %v4679_v17 = vadd.f32 %v4678_v15, %v4677_v12  ;;  %v4658_v19 = vpop.f32.mrf.mxu0  ;;  %4974 = vmatprep.subr.mxu0 %v5403_v55 }
 0x168   :  { %v4680_v18 = vpop.f32.mrf.mxu1  ;;  %v3354_v20 = vadd.f32 %v4657_v16, %v6476_v50  ;;  %4975 = vmatpush3.msra.mxu0 %v3981_v4  ;;  %v3978_v16 = vld [vmem:[%s6679_s2 + $0x98] sm:$0xff]  ;;  %v3975_v19 = vld [vmem:[%s6679_s2 + $0x80] sm:$0xff] }
 0x169   :  { %v4659_v23 = vpop.f32.mrf.mxu0  ;;  %3862 = vmatpush2.bf16.msra.mxu1 %v5395_v21  ;;  %4976 = vmatprep.subr.mxu0 %v5403_v55  ;;  %v3976_v18 = vld [vmem:[%s6679_s2 + $0x88] sm:$0xff]  ;;  %v3973_v21 = vld [vmem:[%s6679_s2 + $0x70] sm:$0xff] }
 0x16a   :  { %v4681_v22 = vpop.f32.mrf.mxu1  ;;  %v3394_v24 = vadd.f32 %v4679_v17, %v3354_v20  ;;  %3863 = vmatprep.subr.bf16.mxu1 %v5402_v44  ;;  %4977 = vmatpush3.msra.mxu0 %v3980_v9  ;;  %v3977_v17 = vld [vmem:[%s6679_s2 + $0x90] sm:$0xff]  ;;  %v3974_v20 = vld [vmem:[%s6679_s2 + $0x78] sm:$0xff]  ;;  %v3971_v23 = vld [vmem:[%s6679_s2 + $0x60] sm:$0xff] }
 0x16b   :  { %4978 = vmatprep.subr.mxu0 %v5403_v55  ;;  %v3972_v22 = vld [vmem:[%s6679_s2 + $0x68] sm:$0xff] }
 0x16c   :  { %4979 = vmatpush3.msra.mxu0 %v3979_v13 }
 0x16d   :  { %3864 = vmatpush2.bf16.msra.mxu1 %v5396_v25  ;;  %4980 = vmatprep.subr.mxu0 %v5403_v55 }
 0x16e   :  { %3865 = vmatprep.subr.bf16.mxu1 %v5402_v44  ;;  %4981 = vmatpush3.msra.mxu0 %v3978_v16 }
 0x16f   :  { %4982 = vmatprep.subr.mxu0 %v5403_v55 }
 0x170   :  { %4983 = vmatpush3.msra.mxu0 %v3977_v17 }
 0x171   :  { %3866 = vmatpush2.bf16.msra.mxu1 %v5397_v26  ;;  %4984 = vmatprep.subr.mxu0 %v5403_v55 }
 0x172   :  { %3867 = vmatprep.subr.bf16.mxu1 %v5402_v44  ;;  %4985 = vmatpush3.msra.mxu0 %v3976_v18 }
 0x173   :  { %4986 = vmatprep.subr.mxu0 %v5403_v55 }
 0x174   :  { %4987 = vmatpush3.msra.mxu0 %v3975_v19 }
 0x175   :  { %3868 = vmatpush2.bf16.msra.mxu1 %v5398_v27  ;;  %4988 = vmatprep.subr.mxu0 %v5403_v55 }
 0x176   :  { %3869 = vmatprep.subr.bf16.mxu1 %v5402_v44  ;;  %4989 = vmatpush3.msra.mxu0 %v3974_v20 }
 0x177   :  { %4990 = vmatprep.subr.mxu0 %v5403_v55 }
 0x178   :  { %4991 = vmatpush3.msra.mxu0 %v3973_v21 }
 0x179   :  { %3870 = vmatpush2.bf16.msra.mxu1 %v5399_v28  ;;  %4992 = vmatprep.subr.mxu0 %v5403_v55 }
 0x17a   :  { %4951 = vmatprep.subr.mxu1 %v5403_v55  ;;  %4993 = vmatpush3.msra.mxu0 %v3972_v22 }
 0x17b   :  { %4994 = vmatprep.subr.mxu0 %v5403_v55 }
 0x17c   :  { %3872 = vmatmul.mubr.bf16.vlgmr.msra.gmra.mxu1 %v4107_v29  ;;  %4995 = vmatpush3.msra.mxu0 %v3971_v23 }
 0x17d   :  { %4952 = vmatpush3.msra.mxu1 %v3887_v52  ;;  %4967 = vmatprep.mubr.msk.f32.mxu1 %vm5404_vm1, %v5403_v55 }
 0x17e   :  { %4953 = vmatprep.subr.mxu1 %v5403_v55  ;;  %4996 = vmatprep.subr.mxu0 %v5403_v55 }
 0x17f   :  { %4954 = vmatpush3.msra.mxu1 %v3886_v56 }
 0x180   :  { %4955 = vmatprep.subr.mxu1 %v5403_v55 }
 0x181   :  { %4956 = vmatpush3.msra.mxu1 %v3885_v57 }
 0x182   :  { %4957 = vmatprep.subr.mxu1 %v5403_v55 }
 0x183   :  { %v4699_v30 = vpop.f32.mrf.mxu0  ;;  %4958 = vmatpush3.msra.mxu1 %v3884_v58 }
 0x184   :  { %v4721_v31 = vpop.f32.mrf.mxu1  ;;  %4959 = vmatprep.subr.mxu1 %v5403_v55 }
 0x185   :  { %v4700_v32 = vpop.f32.mrf.mxu0  ;;  %4960 = vmatpush3.msra.mxu1 %v3883_v59 }
 0x186   :  { %v4701_v33 = vadd.f32 %v4700_v32, %v4699_v30  ;;  %v4722_v34 = vpop.f32.mrf.mxu1  ;;  %4961 = vmatprep.subr.mxu1 %v5403_v55 }
 0x187   :  { %v4723_v35 = vadd.f32 %v4722_v34, %v4721_v31  ;;  %v4702_v36 = vpop.f32.mrf.mxu0  ;;  %4962 = vmatpush3.msra.mxu1 %v3882_v60 }
 0x188   :  { %v3434_v37 = vadd.f32 %v4701_v33, %v3394_v24  ;;  %v4724_v38 = vpop.f32.mrf.mxu1  ;;  %4963 = vmatprep.subr.mxu1 %v5403_v55 }
 0x189   :  { %v4703_v39 = vpop.f32.mrf.mxu0  ;;  %4964 = vmatpush3.msra.mxu1 %v3881_v61  ;;  %v3970_v61 = vld [vmem:[%s6679_s2 + $0x58] sm:$0xff] }
 0x18a   :  { %v3474_v40 = vadd.f32 %v4723_v35, %v3434_v37  ;;  %v4725_v41 = vpop.f32.mrf.mxu1  ;;  %4965 = vmatprep.subr.mxu1 %v5403_v55  ;;  %4997 = vmatpush3.msra.mxu0 %v3970_v61 }
 0x18b   :  { %4966 = vmatpush3.msra.mxu1 %v3880_v62  ;;  %4998 = vmatprep.subr.mxu0 %v5403_v55  ;;  %v3969_v62 = vld [vmem:[%s6679_s2 + $0x50] sm:$0xff] }
 0x18c   :  { %4999 = vmatpush3.msra.mxu0 %v3969_v62 }
 0x18d   :  { %5000 = vmatprep.subr.mxu0 %v5403_v55 }
 0x1a3   :  { %v4743_v42 = vpop.f32.mrf.mxu0 }
 0x1a4   :  { %v4765_v43 = vpop.f32.mrf.mxu1 }
 0x1a5   :  { %v4744_v45 = vpop.f32.mrf.mxu0 }
 0x1a6   :  { %v4745_v46 = vadd.f32 %v4744_v45, %v4743_v42  ;;  %v4766_v44 = vpop.f32.mrf.mxu1 }
 0x1a7   :  { %v4767_v47 = vadd.f32 %v4766_v44, %v4765_v43  ;;  %v4746_v48 = vpop.f32.mrf.mxu0 }
 0x1a8   :  { %v3514_v49 = vadd.f32 %v4745_v46, %v3474_v40  ;;  %v4768_v50 = vpop.f32.mrf.mxu1 }
 0x1a9   :  { %v4747_v51 = vpop.f32.mrf.mxu0 }
 0x1aa   :  { %v3554_v53 = vadd.f32 %v4767_v47, %v3514_v49  ;;  %v4769_v54 = vpop.f32.mrf.mxu1 }
 0x1c3   :  { %v4787_v63 = vpop.f32.mrf.mxu0 }
 0x1c4   :  { %v4809_v2 = vpop.f32.mrf.mxu1 }
 0x1c5   :  { %v4788_v3 = vpop.f32.mrf.mxu0 }
 0x1c6   :  { %v4789_v5 = vadd.f32 %v4788_v3, %v4787_v63  ;;  %v4810_v6 = vpop.f32.mrf.mxu1  ;;  %v3968_v63 = vld [vmem:[%s6679_s2 + $0x48] sm:$0xff] }
 0x1c7   :  { %v4811_v7 = vadd.f32 %v4810_v6, %v4809_v2  ;;  %v4790_v8 = vpop.f32.mrf.mxu0  ;;  %5001 = vmatpush3.msra.mxu0 %v3968_v63 }
 0x1c8   :  { %v3594_v10 = vadd.f32 %v4789_v5, %v3554_v53  ;;  %v4812_v11 = vpop.f32.mrf.mxu1  ;;  %v4462_v5 = vld [vmem:[%s6679_s2 + $0x2] ss:$0 sm:$0xff] }
 0x1c9   :  { %v4791_v12 = vpop.f32.mrf.mxu0 }
 0x1ca   :  { %v3634_v14 = vadd.f32 %v4811_v7, %v3594_v10  ;;  %v4813_v15 = vpop.f32.mrf.mxu1 }
 0x1e3   :  { %v4831_v24 = vpop.f32.mrf.mxu0 }
 0x1e4   :  { %v4853_v25 = vpop.f32.mrf.mxu1 }
 0x1e5   :  { %v4832_v26 = vpop.f32.mrf.mxu0 }
 0x1e6   :  { %v4854_v27 = vpop.f32.mrf.mxu1  ;;  %v4833_v28 = vadd.f32 %v4832_v26, %v4831_v24 }
 0x1e7   :  { %v4855_v29 = vadd.f32 %v4854_v27, %v4853_v25  ;;  %v4834_v31 = vpop.f32.mrf.mxu0 }
 0x1e8   :  { %v4856_v30 = vpop.f32.mrf.mxu1  ;;  %v3674_v32 = vadd.f32 %v4833_v28, %v3634_v14 }
 0x1e9   :  { %v4835_v34 = vpop.f32.mrf.mxu0 }
 0x1ea   :  { %v4857_v33 = vpop.f32.mrf.mxu1  ;;  %v3714_v35 = vadd.f32 %v4855_v29, %v3674_v32 }
 0x203   :  { %v4875_v36 = vpop.f32.mrf.mxu0 }
 0x204   :  { %v4897_v37 = vpop.f32.mrf.mxu1 }
 0x205   :  { %v4876_v38 = vpop.f32.mrf.mxu0 }
 0x206   :  { %v4898_v39 = vpop.f32.mrf.mxu1  ;;  %v4877_v48 = vadd.f32 %v4876_v38, %v4875_v36 }
 0x207   :  { %v4878_v40 = vpop.f32.mrf.mxu0  ;;  %v4899_v50 = vadd.f32 %v4898_v39, %v4897_v37 }
 0x208   :  { %v4900_v41 = vpop.f32.mrf.mxu1  ;;  %v3754_v49 = vadd.f32 %v4877_v48, %v3714_v35 }
 0x209   :  { %v4879_v42 = vpop.f32.mrf.mxu0 }
 0x20a   :  { %v4901_v43 = vpop.f32.mrf.mxu1  ;;  %v3794_v52 = vadd.f32 %v4899_v50, %v3754_v49 }
 0x223   :  { %v4919_v45 = vpop.f32.mrf.mxu0 }
 0x225   :  { %v4920_v46 = vpop.f32.mrf.mxu0 }
 0x226   :  { %v4921_v51 = vadd.f32 %v4920_v46, %v4919_v45 }
 0x227   :  { %v4922_v44 = vpop.f32.mrf.mxu0 }
 0x228   :  { %v3834_v53 = vadd.f32 %v4921_v51, %v3794_v52 }
 0x229   :  { %v4923_v47 = vpop.f32.mrf.mxu0 }
 0x23c   :  { %v3873_v54 = vpop.f32.mrf.mxu1 }
 0x23d   :  { %v3874_v56 = vadd.f32 %v3873_v54, %v3834_v53 }
 0x23e   :  { %v3875_v57 = vpop.f32.mrf.mxu1 }
 0x23f   :  { %v3879_v58 = vmax.f32 %v3874_v56, 0.0 }
 0x240   :  { %v3876_v59 = vpop.f32.mrf.mxu1 }
 0x241   :  { %4968 = vmatmul.mubr.msk.f32.vlgmr.msra.gmra.mxu1 %vm3893_vm2, %v3879_v58 }
 0x242   :  { %v3877_v60 = vpop.f32.mrf.mxu1 }
 0x301   :  { %v3963_v1 = vpop.f32.mrf.mxu1 }
 0x302   :  { %v3964_v2 = vadd.f32 %v4460_v0, %v3963_v1 }
 0x303   :  { %v4969_v3 = vpop.f32.mrf.mxu1 }
 0x304   :  { %v3967_v4 = vmax.f32 %v3964_v2, 0.0 }
 0x306   :  { %5003 = vmatmul.mubr.f32.vlgmr.msra.gmra.mxu0 %v3967_v4 }
 0x3c6   :  { %v4055_v6 = vpop.f32.mrf.mxu0 }
 0x3c7   :  { %v4056_v55 = vadd.f32 %v4462_v5, %v4055_v6 }
 0x3c8   :  { %v5004_v7 = vpop.f32.mrf.mxu0 }
 0x3c9   :  { %4059 = vst [vmem:[%s6680_s3] sm:$0xff] %v4056_v55 }

</bundles_post_ra>
